<compile_context>
chip_gen: v5e
topology: v5e:2x2
jax: 0.10.0
libtpu: 0.0.40
codegen_flags: <defaults>
</compile_context>

<pallas_src>
import math
import functools

import jax
import jax.numpy as jnp
from jax import lax
from jax.experimental import pallas as pl
from jax.experimental.pallas import tpu as pltpu


def _round_up(x, m):
    return (x + m - 1) // m * m


def _erf_poly(z):
    # Abramowitz & Stegun 7.1.26, |abs err| <= 1.5e-7. Only exp/VPU ops, so it
    # lowers on every TPU generation (EUP exp slot, VALU for the rest).
    az = jnp.abs(z)
    t = 1.0 / (1.0 + 0.3275911 * az)
    poly = ((((1.061405429 * t - 1.453152027) * t + 1.421413741) * t
             - 0.284496736) * t + 0.254829592) * t
    e = 1.0 - poly * jnp.exp(-az * az)
    return jnp.where(z < 0.0, -e, e)


def _conv_bn_gelu_kernel(x_hbm, w_ref, bias_ref, o_ref, xbuf, sem,
                         *, TH, W, KH, KWC1, C2p):
    # x_hbm:    (N, Hp*W, KWC1) bf16, width-taps packed, resident in HBM (ANY)
    # w_ref:    (KH, KWC1, C2p) bf16, BN scale folded in (VMEM resident)
    # bias_ref: (1, C2p)        f32 folded BN bias
    # o_ref:    (1, TH*W, C2p)  f32 output tile (lane-dense last dim)
    # xbuf:     (2, (TH+KH-1)*W, KWC1) bf16 double-buffered halo'd input tile
    # sem:      (2,) DMA semaphores
    n = pl.program_id(0)
    t = pl.program_id(1)
    nT = pl.num_programs(1)
    rows_win = (TH + KH - 1) * W
    rows_out = TH * W

    def fetch(tt, slot):
        pltpu.make_async_copy(
            x_hbm.at[n, pl.ds(tt * TH * W, rows_win)],
            xbuf.at[slot],
            sem.at[slot],
        ).start()

    # Prime the pipeline at the first tile of every image (t axis is
    # sequential, so this is safe even when the N axis is core-parallel).
    @pl.when(t == 0)
    def _():
        fetch(0, 0)

    slot = t % 2

    # Prefetch the next tile of this image while computing the current one.
    @pl.when(t + 1 < nT)
    def _():
        fetch(t + 1, 1 - slot)

    # Wait for the current tile's DMA.
    pltpu.make_async_copy(
        x_hbm.at[n, pl.ds(t * TH * W, rows_win)],
        xbuf.at[slot],
        sem.at[slot],
    ).wait()

    win = xbuf[slot]                                     # (rows_win, KWC1) bf16

    # Conv = KH matmuls with contraction KW*C1p (kw taps pre-packed).
    # bf16 operands, f32 accumulation on the MXU. kh slices are static and
    # sublane-aligned (offsets kh*W) -> pure vreg selection, no relayout.
    acc = jnp.zeros((rows_out, C2p), jnp.float32)
    for kh in range(KH):
        lhs = win[kh * W: kh * W + rows_out]
        acc = acc + jnp.dot(lhs, w_ref[kh],
                            preferred_element_type=jnp.float32)

    # BN (scale already folded into the weight) + exact erf-GELU, in f32.
    y = acc + bias_ref[...]
    y = 0.5 * y * (1.0 + _erf_poly(y * (1.0 / math.sqrt(2.0))))
    o_ref[...] = y[None].astype(o_ref.dtype)


def conv_bn_gelu(x_nchw, weight, bn_gamma, bn_beta, bn_mean, bn_var,
                 *, k=3, eps=1e-5, tile_h=8):
    """x_nchw: (N, C1, H, W); weight: (C2, C1, k, k). Returns (N, C2, H, W)."""
    N, C1, H, W = x_nchw.shape
    C2 = weight.shape[0]
    KH = KW = k
    pad = k // 2  # autopad(k, None, 1)

    C1p = _round_up(C1, 128)
    C2p = _round_up(C2, 128)
    KWC1 = KW * C1p

    # Spatial H tile (halo'd). Requires W % 8 == 0 for aligned kh slices
    # (holds for the shapes this encoder block sees).
    TH = tile_h if (tile_h < H and H % tile_h == 0) else H
    nT = H // TH
    Hwin = TH + KH - 1

    # Fold BatchNorm (inference) into per-channel scale (into the weight)
    # and a per-channel bias.
    scale = bn_gamma / jnp.sqrt(bn_var + eps)                       # (C2,)
    bias = bn_beta - bn_mean * scale                                # (C2,)
    bias2 = jnp.pad(bias.reshape(1, C2).astype(jnp.float32),
                    ((0, 0), (0, C2p - C2)))                        # (1, C2p)

    # (C2, C1, KH, KW) -> (KH, KW, C1, C2), fold BN scale, pad channels,
    # pack kw taps onto the contraction axis.
    wt = jnp.transpose(weight, (2, 3, 1, 0)).astype(jnp.float32)
    wt = wt * scale.reshape(1, 1, 1, C2)
    wt = jnp.pad(wt, ((0, 0), (0, 0), (0, C1p - C1), (0, C2p - C2)))
    w_packed = wt.reshape(KH, KW * C1p, C2p).astype(jnp.bfloat16)   # (KH, KWC1, C2p)

    # NCHW -> NHWC, spatial zero-pad, channel pad to 128, bf16, pack width
    # taps, then flatten (H, W) so the halo window is one contiguous DMA.
    x = jnp.transpose(x_nchw, (0, 2, 3, 1)).astype(jnp.float32)
    x = jnp.pad(x, ((0, 0), (pad, pad), (pad, pad), (0, C1p - C1)))
    x = x.astype(jnp.bfloat16)                                      # (N, Hp, Wp, C1p)
    x_packed = jnp.concatenate(
        [x[:, :, kw:kw + W, :] for kw in range(KW)], axis=-1)       # (N, Hp, W, KWC1)
    Hp = H + 2 * pad
    x_flat = x_packed.reshape(N, Hp * W, KWC1)                      # (N, Hp*W, KWC1)

    kernel = functools.partial(_conv_bn_gelu_kernel,
                               TH=TH, W=W, KH=KH, KWC1=KWC1, C2p=C2p)

    out = pl.pallas_call(
        kernel,
        out_shape=jax.ShapeDtypeStruct((N, H * W, C2p), jnp.float32),
        grid_spec=pltpu.PrefetchScalarGridSpec(
            num_scalar_prefetch=0,
            grid=(N, nT),
            in_specs=[
                pl.BlockSpec(memory_space=pl.ANY),                   # x stays in HBM
                pl.BlockSpec((KH, KWC1, C2p), lambda n, t: (0, 0, 0)),
                pl.BlockSpec((1, C2p), lambda n, t: (0, 0)),
            ],
            out_specs=pl.BlockSpec((1, TH * W, C2p), lambda n, t: (n, t, 0)),
            scratch_shapes=[
                pltpu.VMEM((2, Hwin * W, KWC1), jnp.bfloat16),
                pltpu.SemaphoreType.DMA((2,)),
            ],
        ),
        compiler_params=pltpu.CompilerParams(
            # H-tile axis stays sequential: the manual halo DMA primes at
            # t == 0 and prefetches t+1 within one image. N axis is parallel
            # (megacore sharding).
            dimension_semantics=("parallel", "arbitrary"),
            vmem_limit_bytes=32 * 1024 * 1024,
        ),
    )(x_flat, w_packed, bias2)

    out = out.reshape(N, H, W, C2p)[:, :, :, :C2]
    # TODO(synk): keep NHWC output (skip this transpose) if the consumer allows.
    return jnp.transpose(out, (0, 3, 1, 2))                         # back to NCHW


def _reference(x_nchw, weight, bn_gamma, bn_beta, bn_mean, bn_var,
               *, k=3, eps=1e-5):
    pad = k // 2
    y = lax.conv_general_dilated(
        x_nchw.astype(jnp.float32), weight.astype(jnp.float32),
        window_strides=(1, 1), padding=((pad, pad), (pad, pad)),
        dimension_numbers=("NCHW", "OIHW", "NCHW"))
    scale = (bn_gamma / jnp.sqrt(bn_var + eps)).reshape(1, -1, 1, 1)
    bias = (bn_beta - bn_mean * bn_gamma / jnp.sqrt(bn_var + eps)
            ).reshape(1, -1, 1, 1)
    y = y * scale + bias
    return 0.5 * y * (1.0 + lax.erf(y / math.sqrt(2.0)))


if __name__ == "__main__":
    key = jax.random.PRNGKey(0)
    k_x, k_w, k_g, k_b, k_m, k_v = jax.random.split(key, 6)

    N, C1, H, W = 2, 4, 16, 16
    C2, K = 8, 3

    x = jax.random.normal(k_x, (N, C1, H, W), dtype=jnp.float32)
    # Deterministic parameter init (synthetic — not a checkpoint load).
    fan_in = C1 * K * K
    weight = jax.random.normal(k_w, (C2, C1, K, K), jnp.float32) / math.sqrt(fan_in)
    bn_gamma = 1.0 + 0.1 * jax.random.normal(k_g, (C2,), jnp.float32)
    bn_beta = 0.1 * jax.random.normal(k_b, (C2,), jnp.float32)
    bn_mean = 0.1 * jax.random.normal(k_m, (C2,), jnp.float32)
    bn_var = jnp.abs(jax.random.normal(k_v, (C2,), jnp.float32)) + 0.5

    out = conv_bn_gelu(x, weight, bn_gamma, bn_beta, bn_mean, bn_var, k=K)
    out = jax.block_until_ready(out)

    ref = _reference(x, weight, bn_gamma, bn_beta, bn_mean, bn_var, k=K)
    assert out.shape == (N, C2, H, W)
    # bf16 matmul operands (f32 accumulation) => looser tolerance than pure f32.
    err = float(jnp.max(jnp.abs(out - ref)))
    assert jnp.allclose(out, ref, atol=4e-2, rtol=4e-2), err

    print("KERNEL_OK")
</pallas_src>

<mosaic_0001>
module attributes {stable_mosaic.version = 11 : i64} {
  func.func @_conv_bn_gelu_kernel(%arg0: i32, %arg1: i32, %arg2: memref<2x288x384xbf16, #tpu.memory_space<any>>, %arg3: memref<3x384x128xbf16, #tpu.memory_space<vmem>>, %arg4: memref<1x128xf32, #tpu.memory_space<vmem>>, %arg5: memref<1x128x128xf32, #tpu.memory_space<vmem>>, %arg6: memref<2x160x384xbf16, #tpu.memory_space<vmem>>, %arg7: memref<2x!tpu.dma_semaphore, #tpu.memory_space<semaphore_mem>>) attributes {dimension_semantics = [#tpu.dimension_semantics<parallel>, #tpu.dimension_semantics<arbitrary>], iteration_bounds = array<i64: 2, 2>, scalar_prefetch = 0 : i64, scratch_operands = 2 : i64, tpu.core_type = #tpu.core_type<tc>, window_params = [{}, {pipeline_mode = #tpu.pipeline_mode<synchronous>, transform_indices = @transform_1, window_bounds = array<i64: 3, 384, 128>}, {pipeline_mode = #tpu.pipeline_mode<synchronous>, transform_indices = @transform_2, window_bounds = array<i64: 1, 128>}, {transform_indices = @transform_3, window_bounds = array<i64: 1, 128, 128>}]} {
    %c0_i32 = arith.constant 0 : i32
    %0 = arith.cmpi eq, %arg1, %c0_i32 : i32
    %1 = arith.extui %0 : i1 to i32
    %c0_i32_0 = arith.constant 0 : i32
    %2 = arith.cmpi ne, %1, %c0_i32_0 : i32
    scf.if %2 {
      %c0_i32_42 = arith.constant 0 : i32
      %c0_i32_43 = arith.constant 0 : i32
      %c0_i32_44 = arith.constant 0 : i32
      %c0_i32_45 = arith.constant 0 : i32
      %89 = tpu.memref_slice %arg2[%arg0, %c0_i32_44, %c0_i32_45] : memref<2x288x384xbf16, #tpu.memory_space<any>> -> memref<1x160x384xbf16, #tpu.memory_space<any>>
      %90 = tpu.memref_squeeze %89 : memref<1x160x384xbf16, #tpu.memory_space<any>> -> memref<160x384xbf16, #tpu.memory_space<any>>
      %c0_i32_46 = arith.constant 0 : i32
      %c0_i32_47 = arith.constant 0 : i32
      %91 = tpu.memref_slice %arg6[%c0_i32_42, %c0_i32_46, %c0_i32_47] : memref<2x160x384xbf16, #tpu.memory_space<vmem>> -> memref<1x160x384xbf16, #tpu.memory_space<vmem>>
      %92 = tpu.memref_squeeze %91 : memref<1x160x384xbf16, #tpu.memory_space<vmem>> -> memref<160x384xbf16, #tpu.memory_space<vmem>>
      %93 = tpu.memref_slice %arg7[%c0_i32_43] : memref<2x!tpu.dma_semaphore, #tpu.memory_space<semaphore_mem>> -> memref<1x!tpu.dma_semaphore, #tpu.memory_space<semaphore_mem>>
      %94 = tpu.memref_squeeze %93 : memref<1x!tpu.dma_semaphore, #tpu.memory_space<semaphore_mem>> -> memref<!tpu.dma_semaphore, #tpu.memory_space<semaphore_mem>>
      tpu.enqueue_dma source(%90 : memref<160x384xbf16, #tpu.memory_space<any>>) target(%92 : memref<160x384xbf16, #tpu.memory_space<vmem>>) target_semaphore(%94 : memref<!tpu.dma_semaphore, #tpu.memory_space<semaphore_mem>>)
    } else {
    }
    %c2_i32 = arith.constant 2 : i32
    %c0_i32_1 = arith.constant 0 : i32
    %3 = arith.cmpi eq, %c2_i32, %c0_i32_1 : i32
    %c1_i32 = arith.constant 1 : i32
    %4 = arith.select %3, %c1_i32, %c2_i32 : i32
    %5 = arith.remsi %arg1, %4 : i32
    %c0_i32_2 = arith.constant 0 : i32
    %6 = arith.cmpi ne, %5, %c0_i32_2 : i32
    %c0_i32_3 = arith.constant 0 : i32
    %7 = arith.cmpi slt, %5, %c0_i32_3 : i32
    %c0_i32_4 = arith.constant 0 : i32
    %8 = arith.cmpi slt, %4, %c0_i32_4 : i32
    %9 = arith.xori %7, %8 : i1
    %10 = arith.andi %9, %6 : i1
    %11 = arith.addi %5, %4 : i32
    %12 = arith.select %10, %11, %5 : i32
    %c1_i32_5 = arith.constant 1 : i32
    %13 = arith.addi %arg1, %c1_i32_5 : i32
    %c2_i32_6 = arith.constant 2 : i32
    %14 = arith.cmpi slt, %13, %c2_i32_6 : i32
    %15 = arith.extui %14 : i1 to i32
    %c0_i32_7 = arith.constant 0 : i32
    %16 = arith.cmpi ne, %15, %c0_i32_7 : i32
    scf.if %16 {
      %c1_i32_42 = arith.constant 1 : i32
      %89 = arith.addi %arg1, %c1_i32_42 : i32
      %c1_i32_43 = arith.constant 1 : i32
      %90 = arith.subi %c1_i32_43, %12 : i32
      %c8_i32_44 = arith.constant 8 : i32
      %91 = arith.muli %89, %c8_i32_44 : i32
      %c16_i32_45 = arith.constant 16 : i32
      %92 = arith.muli %91, %c16_i32_45 : i32
      %c0_i32_46 = arith.constant 0 : i32
      %93 = tpu.memref_slice %arg2[%arg0, %92, %c0_i32_46] : memref<2x288x384xbf16, #tpu.memory_space<any>> -> memref<1x160x384xbf16, #tpu.memory_space<any>>
      %94 = tpu.memref_squeeze %93 : memref<1x160x384xbf16, #tpu.memory_space<any>> -> memref<160x384xbf16, #tpu.memory_space<any>>
      %c0_i32_47 = arith.constant 0 : i32
      %c0_i32_48 = arith.constant 0 : i32
      %95 = tpu.memref_slice %arg6[%90, %c0_i32_47, %c0_i32_48] : memref<2x160x384xbf16, #tpu.memory_space<vmem>> -> memref<1x160x384xbf16, #tpu.memory_space<vmem>>
      %96 = tpu.memref_squeeze %95 : memref<1x160x384xbf16, #tpu.memory_space<vmem>> -> memref<160x384xbf16, #tpu.memory_space<vmem>>
      %97 = tpu.memref_slice %arg7[%90] : memref<2x!tpu.dma_semaphore, #tpu.memory_space<semaphore_mem>> -> memref<1x!tpu.dma_semaphore, #tpu.memory_space<semaphore_mem>>
      %98 = tpu.memref_squeeze %97 : memref<1x!tpu.dma_semaphore, #tpu.memory_space<semaphore_mem>> -> memref<!tpu.dma_semaphore, #tpu.memory_space<semaphore_mem>>
      tpu.enqueue_dma source(%94 : memref<160x384xbf16, #tpu.memory_space<any>>) target(%96 : memref<160x384xbf16, #tpu.memory_space<vmem>>) target_semaphore(%98 : memref<!tpu.dma_semaphore, #tpu.memory_space<semaphore_mem>>)
    } else {
    }
    %c8_i32 = arith.constant 8 : i32
    %17 = arith.muli %arg1, %c8_i32 : i32
    %c16_i32 = arith.constant 16 : i32
    %18 = arith.muli %17, %c16_i32 : i32
    %c0_i32_8 = arith.constant 0 : i32
    %19 = tpu.memref_slice %arg2[%arg0, %18, %c0_i32_8] : memref<2x288x384xbf16, #tpu.memory_space<any>> -> memref<1x160x384xbf16, #tpu.memory_space<any>>
    %20 = tpu.memref_squeeze %19 : memref<1x160x384xbf16, #tpu.memory_space<any>> -> memref<160x384xbf16, #tpu.memory_space<any>>
    %c0_i32_9 = arith.constant 0 : i32
    %c0_i32_10 = arith.constant 0 : i32
    %21 = tpu.memref_slice %arg6[%12, %c0_i32_9, %c0_i32_10] : memref<2x160x384xbf16, #tpu.memory_space<vmem>> -> memref<1x160x384xbf16, #tpu.memory_space<vmem>>
    %22 = tpu.memref_squeeze %21 : memref<1x160x384xbf16, #tpu.memory_space<vmem>> -> memref<160x384xbf16, #tpu.memory_space<vmem>>
    %23 = tpu.memref_slice %arg7[%12] : memref<2x!tpu.dma_semaphore, #tpu.memory_space<semaphore_mem>> -> memref<1x!tpu.dma_semaphore, #tpu.memory_space<semaphore_mem>>
    %24 = tpu.memref_squeeze %23 : memref<1x!tpu.dma_semaphore, #tpu.memory_space<semaphore_mem>> -> memref<!tpu.dma_semaphore, #tpu.memory_space<semaphore_mem>>
    tpu.wait_dma2 semaphore(%24 : memref<!tpu.dma_semaphore, #tpu.memory_space<semaphore_mem>>) src(%20 : memref<160x384xbf16, #tpu.memory_space<any>>) dst(%22 : memref<160x384xbf16, #tpu.memory_space<vmem>>)
    %25 = arith.index_cast %12 : i32 to index
    %c0 = arith.constant 0 : index
    %c0_11 = arith.constant 0 : index
    %26 = vector.load %arg6[%25, %c0, %c0_11] : memref<2x160x384xbf16, #tpu.memory_space<vmem>>, vector<1x160x384xbf16>
    %27 = vector.shape_cast %26 : vector<1x160x384xbf16> to vector<160x384xbf16>
    %cst = arith.constant 0.000000e+00 : f32
    %28 = vector.broadcast %cst : f32 to vector<128x128xf32>
    %29 = vector.extract_strided_slice %27 {offsets = [0, 0], sizes = [128, 384], strides = [1, 1]} : vector<160x384xbf16> to vector<128x384xbf16>
    %c0_12 = arith.constant 0 : index
    %c0_13 = arith.constant 0 : index
    %c0_14 = arith.constant 0 : index
    %30 = vector.load %arg3[%c0_12, %c0_13, %c0_14] : memref<3x384x128xbf16, #tpu.memory_space<vmem>>, vector<1x384x128xbf16>
    %31 = vector.shape_cast %30 : vector<1x384x128xbf16> to vector<384x128xbf16>
    %cst_15 = arith.constant dense<0.000000e+00> : vector<128x128xf32>
    %32 = tpu.matmul %29, %31, %cst_15 {dimension_numbers = #tpu.dot_dimension_numbers<[1], [0], [0], [1], [0, 0, 1, 1], [], []>} : vector<128x384xbf16>, vector<384x128xbf16>, vector<128x128xf32> -> vector<128x128xf32>
    %33 = arith.addf %28, %32 : vector<128x128xf32>
    %34 = vector.extract_strided_slice %27 {offsets = [16, 0], sizes = [128, 384], strides = [1, 1]} : vector<160x384xbf16> to vector<128x384xbf16>
    %c1 = arith.constant 1 : index
    %c0_16 = arith.constant 0 : index
    %c0_17 = arith.constant 0 : index
    %35 = vector.load %arg3[%c1, %c0_16, %c0_17] : memref<3x384x128xbf16, #tpu.memory_space<vmem>>, vector<1x384x128xbf16>
    %36 = vector.shape_cast %35 : vector<1x384x128xbf16> to vector<384x128xbf16>
    %cst_18 = arith.constant dense<0.000000e+00> : vector<128x128xf32>
    %37 = tpu.matmul %34, %36, %cst_18 {dimension_numbers = #tpu.dot_dimension_numbers<[1], [0], [0], [1], [0, 0, 1, 1], [], []>} : vector<128x384xbf16>, vector<384x128xbf16>, vector<128x128xf32> -> vector<128x128xf32>
    %38 = arith.addf %33, %37 : vector<128x128xf32>
    %39 = vector.extract_strided_slice %27 {offsets = [32, 0], sizes = [128, 384], strides = [1, 1]} : vector<160x384xbf16> to vector<128x384xbf16>
    %c2 = arith.constant 2 : index
    %c0_19 = arith.constant 0 : index
    %c0_20 = arith.constant 0 : index
    %40 = vector.load %arg3[%c2, %c0_19, %c0_20] : memref<3x384x128xbf16, #tpu.memory_space<vmem>>, vector<1x384x128xbf16>
    %41 = vector.shape_cast %40 : vector<1x384x128xbf16> to vector<384x128xbf16>
    %cst_21 = arith.constant dense<0.000000e+00> : vector<128x128xf32>
    %42 = tpu.matmul %39, %41, %cst_21 {dimension_numbers = #tpu.dot_dimension_numbers<[1], [0], [0], [1], [0, 0, 1, 1], [], []>} : vector<128x384xbf16>, vector<384x128xbf16>, vector<128x128xf32> -> vector<128x128xf32>
    %43 = arith.addf %38, %42 : vector<128x128xf32>
    %c0_22 = arith.constant 0 : index
    %c0_23 = arith.constant 0 : index
    %44 = vector.load %arg4[%c0_22, %c0_23] : memref<1x128xf32, #tpu.memory_space<vmem>>, vector<1x128xf32>
    %45 = vector.broadcast %44 : vector<1x128xf32> to vector<128x128xf32>
    %46 = arith.addf %43, %45 : vector<128x128xf32>
    %cst_24 = arith.constant 5.000000e-01 : f32
    %47 = vector.broadcast %cst_24 : f32 to vector<128x128xf32>
    %48 = arith.mulf %47, %46 : vector<128x128xf32>
    %cst_25 = arith.constant 0.707106769 : f32
    %49 = vector.broadcast %cst_25 : f32 to vector<128x128xf32>
    %50 = arith.mulf %46, %49 : vector<128x128xf32>
    %51 = math.absf %50 : vector<128x128xf32>
    %cst_26 = arith.constant 0.327591091 : f32
    %52 = vector.broadcast %cst_26 : f32 to vector<128x128xf32>
    %53 = arith.mulf %52, %51 : vector<128x128xf32>
    %cst_27 = arith.constant 1.000000e+00 : f32
    %54 = vector.broadcast %cst_27 : f32 to vector<128x128xf32>
    %55 = arith.addf %54, %53 : vector<128x128xf32>
    %cst_28 = arith.constant 1.000000e+00 : f32
    %56 = vector.broadcast %cst_28 : f32 to vector<128x128xf32>
    %57 = arith.divf %56, %55 : vector<128x128xf32>
    %cst_29 = arith.constant 1.06140542 : f32
    %58 = vector.broadcast %cst_29 : f32 to vector<128x128xf32>
    %59 = arith.mulf %58, %57 : vector<128x128xf32>
    %cst_30 = arith.constant 1.45315206 : f32
    %60 = vector.broadcast %cst_30 : f32 to vector<128x128xf32>
    %61 = arith.subf %59, %60 : vector<128x128xf32>
    %62 = arith.mulf %61, %57 : vector<128x128xf32>
    %cst_31 = arith.constant 1.42141378 : f32
    %63 = vector.broadcast %cst_31 : f32 to vector<128x128xf32>
    %64 = arith.addf %62, %63 : vector<128x128xf32>
    %65 = arith.mulf %64, %57 : vector<128x128xf32>
    %cst_32 = arith.constant 0.284496725 : f32
    %66 = vector.broadcast %cst_32 : f32 to vector<128x128xf32>
    %67 = arith.subf %65, %66 : vector<128x128xf32>
    %68 = arith.mulf %67, %57 : vector<128x128xf32>
    %cst_33 = arith.constant 0.254829586 : f32
    %69 = vector.broadcast %cst_33 : f32 to vector<128x128xf32>
    %70 = arith.addf %68, %69 : vector<128x128xf32>
    %71 = arith.mulf %70, %57 : vector<128x128xf32>
    %cst_34 = arith.constant 0.000000e+00 : f32
    %72 = vector.broadcast %cst_34 : f32 to vector<128x128xf32>
    %73 = arith.subf %72, %51 : vector<128x128xf32>
    %74 = arith.mulf %73, %51 : vector<128x128xf32>
    %75 = math.exp %74 : vector<128x128xf32>
    %76 = arith.mulf %71, %75 : vector<128x128xf32>
    %cst_35 = arith.constant 1.000000e+00 : f32
    %77 = vector.broadcast %cst_35 : f32 to vector<128x128xf32>
    %78 = arith.subf %77, %76 : vector<128x128xf32>
    %cst_36 = arith.constant 0.000000e+00 : f32
    %79 = vector.broadcast %cst_36 : f32 to vector<128x128xf32>
    %80 = arith.cmpf olt, %50, %79 : vector<128x128xf32>
    %cst_37 = arith.constant 0.000000e+00 : f32
    %81 = vector.broadcast %cst_37 : f32 to vector<128x128xf32>
    %82 = arith.subf %81, %78 : vector<128x128xf32>
    %83 = arith.select %80, %82, %78 : vector<128x128xi1>, vector<128x128xf32>
    %cst_38 = arith.constant 1.000000e+00 : f32
    %84 = vector.broadcast %cst_38 : f32 to vector<128x128xf32>
    %85 = arith.addf %84, %83 : vector<128x128xf32>
    %86 = arith.mulf %48, %85 : vector<128x128xf32>
    %87 = vector.shape_cast %86 : vector<128x128xf32> to vector<1x128x128xf32>
    %c0_39 = arith.constant 0 : index
    %c0_40 = arith.constant 0 : index
    %c0_41 = arith.constant 0 : index
    %88 = vector.load %arg5[%c0_39, %c0_40, %c0_41] : memref<1x128x128xf32, #tpu.memory_space<vmem>>, vector<1x128x128xf32>
    tpu.vector_store %arg5[%c0_39, %c0_40, %c0_41], %87 {strides = array<i32>} : memref<1x128x128xf32, #tpu.memory_space<vmem>>, vector<1x128x128xf32>,
    return
  }
  func.func @transform_1(%arg0: i32, %arg1: i32) -> (i32, i32, i32) {
    %c0_i32 = arith.constant 0 : i32
    %c0_i32_0 = arith.constant 0 : i32
    %c0_i32_1 = arith.constant 0 : i32
    %c0_i32_2 = arith.constant 0 : i32
    return %c0_i32, %c0_i32_0, %c0_i32_1 : i32, i32, i32
  }
  func.func @transform_2(%arg0: i32, %arg1: i32) -> (i32, i32) {
    %c0_i32 = arith.constant 0 : i32
    %c0_i32_0 = arith.constant 0 : i32
    %c0_i32_1 = arith.constant 0 : i32
    return %c0_i32, %c0_i32_0 : i32, i32
  }
  func.func @transform_3(%arg0: i32, %arg1: i32) -> (i32, i32, i32) {
    %c0_i32 = arith.constant 0 : i32
    %c0_i32_0 = arith.constant 0 : i32
    return %arg0, %arg1, %c0_i32 : i32, i32, i32
  }
}

</mosaic_0001>

<bundles_post_ra>
// kernel: tpu_custom_call.1
= control target key start
LH: loop header
LB: loop body
LE: loop exit
PB: predicated region body
PF: predicated region fallthrough
CT: control target
= control target key end

     0   :  { %s4171_s0 = inlined_call_operand.hbm [shape: bf16[2,288,384], index: 0, kind: input, shape index: {}]   ;;  %s4172_s1 = inlined_call_operand.hbm [shape: bf16[3,384,128], index: 1, kind: input, shape index: {}]   ;;  %s4173_s2 = inlined_call_operand.vmem [shape: f32[1,128], index: 2, kind: input, shape index: {}]   ;;  %s4174_s3 = inlined_call_operand.hbm [shape: f32[2,256,128], index: 3, kind: output, shape index: {}]  }
   0x1   :  { %4182 = sst [smem:[#allocation21_spill]] %s4172_s1 }
   0x2   :  { %8 = vsyncpa [#allocation5], 0 }
   0x3   :  { %9 = vsyncpa [#allocation6], 0 }
   0x4   :  { %11 = vsyncpa [#allocation6 + $0x1], 0  ;;  %s3226_s12 = smov 0   ;;  %s3228_s13 = smov 0  }
   0x5   :  { %s3230_s14 = smov 0   ;;  %s3232_s15 = smov 0  }
   0x6   :  { %s3234_s16 = smov 0   ;;  %s3236_s17 = smov 0  }
   0x7   :  { %s3238_s18 = smov 0   ;;  %s3240_s19 = smov 0  }
   0x8 LB: > { %4183 = sst [smem:[#allocation17_spill]] %s3190_s17  ;;  %s2257_s20 = sadd.s32 4294967295, %s3198_s19   ;;  %s3198_s19 = sphi %s3240_s19, %s17_s19   ;;  %s3194_s18 = sphi %s3238_s18, %s4212_s18   ;;  %s3190_s17 = sphi %s3236_s17, %s4211_s17   ;;  %s3186_s16 = sphi %s3234_s16, %s4210_s16   ;;  %s3182_s15 = sphi %s3232_s15, %s4209_s15   ;;  %s3178_s14 = sphi %s3230_s14, %s4215_s14   ;;  %s3174_s13 = sphi %s3228_s13, %s4214_s13   ;;  %s3170_s12 = sphi %s3226_s12, %s4213_s12  }
   0x9   : > { %4184 = sst [smem:[#allocation18_spill]] %s3194_s18  ;;  %s2258_s21 = sadd.s32 4294967294, %s3198_s19  }
   0xa   : > { %s26_s22 = sadd.s32 1, %s3190_s17  ;;  %s29_s23 = sadd.s32 1, %s3194_s18 }
   0xb   : > { %p27_p0 = scmp.ge.s32.totalorder %s26_s22, 2  ;;  %s80_s24 = sadd.s32 1, %s3178_s14 }
   0xc   : > { %p90_p1 = scmp.ne.s32.totalorder %s3178_s14, %s3174_s13  ;;  %p91_p2 = scmp.eq.s32.totalorder %s2257_s20, 3 }
   0xd   : > { %s4217_s22 = smov (%p27_p0, %s26_s22), 0  ;;  %s4219_s23 = smov (!%p27_p0, %s29_s23), %s3194_s18 }
   0xe   : > { %4185 = sst [smem:[#allocation19_spill]] %s4217_s22  ;;  %s76_s25 = ssub.s32 %s3190_s17, %s4217_s22 }
   0xf   : > { %p3278_p3 = por %p91_p2, %p90_p1  ;;  %p31_p4 = scmp.ge.s32.totalorder %s4219_s23, 2 }
  0x10   : > { %p96_p5 = scmp.ne.s32.totalorder %s3174_s13, %s3170_s12  ;;  %p97_p6 = scmp.eq.s32.totalorder %s2258_s21, 3 }
  0x11   : > { %p2259_p7 = scmp.ge.s32.totalorder %s3198_s19, 1  ;;  %s4221_s23 = smov (%p31_p4, %s4219_s23), 0 }
  0x12   : > { %4187 = sst [smem:[#allocation20_spill]] %s4221_s23  ;;  %p3287_p8 = por %p97_p6, %p96_p5 }
  0x13   : > { %p104_p9 = scmp.lt.s32.totalorder %s3198_s19, 5  ;;  %s75_s28 = ssub.s32 %s3194_s18, %s4221_s23 }
  0x14   : > { %s4188_s27 = scalar_select %p3287_p8, 1, 0 }
  0x15   : > { %s77_s29 = sor.u32 %s76_s25, %s75_s28  ;;  %p3294_p10 = pnand %p2259_p7, %p104_p9 }
  0x16   : > { %p78_p11 = scmp.eq.s32.totalorder %s77_s29, 0  ;;  %p3298_p12 = scmp.eq.s32.totalorder %s2257_s20, 0 }
  0x17   : > { %p2863_p13 = pneg %p3294_p10  ;;  %s4191_s1 = sld [smem:[#allocation21_spill]] }
  0x18   : > { %s3308_s8 = scalar_select %p78_p11, %s3178_s14, %s80_s24  }
  0x19   : > { %s3200_s9 = smov [#allocation4]   ;;  %p2864_p0 = pnand %p3298_p12, %p2863_p13 }
  0x1a   : > { %s117_s10 = sshll.u32 %s3200_s9, 4  ;;  %s3201_s11 = smov 64   ;;  %s118_s10 = int_to_ptr.vmem [resolvable:$true] %s117_s10 }
  0x1b   : > { %s3202_s20 = smov 4   ;;  %136 = sbr.rel (%p3294_p10) target bundleno = 631 (0x277), region = 28 }
  0x1d   : > { %s115_s7 = sshll.u32 %s4191_s1, 4  ;;  %s116_s7 = int_to_ptr.hbm [resolvable:$true] %s115_s7 }
  0x1e   : > { %2866 = dma.hbm_to_vmem [thread:$0]  (!%p2864_p0), %s116_s7, 9216, %s118_s10, [#allocation5], %s3201_s11, %s3201_s11, %s3202_s20  }
  0x20   : > { %3159 = dma.done.wait (%p3298_p12), [#allocation5], 9216  }
  0x21   : > { %3161 = vsyncadd (%p3298_p12), [#allocation5], 4294958080  ;;  %s4175_s21 = sand.u32 1, %s3174_s13   ;;  %p2873_p1 = scmp.eq.s32.totalorder %s3182_s15, 0 }
  0x22   : > { %s3321_s24 = sshll.u32 %s4175_s21, 7  ;;  %s2722_s25 = smul.u32 432, %s3186_s16 }
  0x23   : > { %p175_p2 = scmp.lt.s32.totalorder %s3182_s15, 0  ;;  %s4176_s4 = smov [#allocation2]  }
  0x24   : > { %s161_s30 = scalar_lea.hbm %s4171_s0, %s2722_s25  ;;  %s171_s5 = sshll.u32 %s4176_s4, 4  ;;  %s172_s5 = int_to_ptr.vmem [resolvable:$true] %s171_s5 }
  0x25   : > { %s169_s6 = sshll.u32 %s161_s30, 4  ;;  %s176_s7 = ssub.s32 0, %s3182_s15  ;;  %s170_s6 = int_to_ptr.hbm [resolvable:$true] %s169_s6 }
  0x26   : > { %s3042_s9 = sshra.s32 %s170_s6, 4  ;;  %s4177_s21 = scalar_lea.hbm %s4171_s0, 864  ;;  %s3043_s9 = int_to_ptr.hbm [resolvable:$true] %s3042_s9 }
  0x27   : > { %s3044_s10 = scalar_lea.hbm %s3043_s9, 240  ;;  %p3049_p7 = scmp.lt.s32.totalorder %s3043_s9, %s4171_s0 }
  0x28   : > { %p3045_p4 = scmp.ne.s32.totalorder %s3043_s9, %s3044_s10  ;;  %p3050_p9 = scmp.lt.s32.totalorder %s4177_s21, %s3044_s10 }
  0x2a   : > { %p3046_p5 = pnand %p3045_p4, %p2873_p1  ;;  %p3051_p10 = por %p3050_p9, %p3049_p7 }
  0x2c   : > { %p3047_p6 = pneg %p3046_p5 }
  0x2e   : > { %p3052_p11 = pnand %p3051_p10, %p3047_p6 }
  0x30   : > { %3055 = shalt.err (!%p3052_p11)  }
  0x31   : > { %2858 = dma.hbm_to_vmem [thread:$0]  (%p2873_p1), %s170_s6, 3840, %s172_s5, [#allocation3] }
  0x32   : > { %s2266_s11 = smin.u32 %s3182_s15, %s176_s7  ;;  %s187_s20 = sadd.s32 1, %s3182_s15 }
  0x33   : > { %s178_s28 = sand.u32 1, %s2266_s11   ;;  %s2723_s25 = sshll.u32 %s3182_s15, 7 }
  0x34   : > { %s179_s9 = ssub.s32 0, %s178_s28  ;;  %s2724_s29 = sadd.s32 128, %s2723_s25 }
  0x35   : > { %s4223_s9 = smov (!%p175_p2, %s179_s9), %s178_s28  ;;  %s197_s30 = smul.u32 108, %s3186_s16 }
  0x36   : > { %p2268_p12 = scmp.lt.s32.totalorder %s4223_s9, 0  ;;  %s185_s10 = sadd.s32 2, %s4223_s9 }
  0x37   : > { %p3353_p13 = scmp.lt.s32.totalorder %s187_s20, 2  ;;  %s194_s5 = sshra.s32 %s2724_s29, 3 }
  0x38   : > { %s4225_s10 = smov (!%p2268_p12, %s185_s10), %s4223_s9  ;;  %s196_s7 = smul.u32 3, %s194_s5 }
  0x39   : > { %s192_s6 = ssub.s32 1, %s4225_s10  ;;  %s2726_s28 = smul.u32 240, %s4225_s10 }
  0x3a   : > { %s2725_s11 = smul.u32 240, %s192_s6  ;;  %s198_s21 = sadd.s32 %s197_s30, %s196_s7 }
  0x3b   : > { %s2271_s1 = sshll.u32 %s198_s21, 2  ;;  %s204_s17 = scalar_lea.sflag [#allocation3], %s192_s6 }
  0x3c   : > { %s200_s25 = scalar_lea.hbm %s4171_s0, %s2271_s1  ;;  %s203_s9 = scalar_lea.vmem [#allocation2], %s2725_s11 }
  0x3d   : > { %s3362_s18 = sshll.u32 %s203_s9, 4  ;;  %s212_s20 = sshll.u32 %s200_s25, 4  ;;  %s215_s18 = int_to_ptr.vmem [resolvable:$true] %s3362_s18  ;;  %s213_s20 = int_to_ptr.hbm [resolvable:$true] %s212_s20 }
  0x3e   : > { %s3070_s29 = sshra.s32 %s213_s20, 4  ;;  %s4193_s23 = scalar_lea.hbm %s4171_s0, 864  ;;  %s3071_s29 = int_to_ptr.hbm [resolvable:$true] %s3070_s29 }
  0x3f   : > { %s3072_s5 = scalar_lea.hbm %s3071_s29, 240  ;;  %p3077_p4 = scmp.lt.s32.totalorder %s3071_s29, %s4171_s0 }
  0x40   : > { %p3073_p0 = scmp.ne.s32.totalorder %s3071_s29, %s3072_s5  ;;  %p3078_p5 = scmp.lt.s32.totalorder %s4193_s23, %s3072_s5 }
  0x42   : > { %p3074_p1 = pnand %p3073_p0, %p3353_p13  ;;  %p3079_p6 = por %p3078_p5, %p3077_p4 }
  0x44   : > { %p3075_p2 = pneg %p3074_p1 }
  0x46   : > { %p3080_p7 = pnand %p3079_p6, %p3075_p2 }
  0x48   : > { %3083 = shalt.err (!%p3080_p7)  }
  0x49   : > { %s3084_s6 = sshra.s32 %s215_s18, 4  ;;  %s4194_s11 = smov [#allocation2]   ;;  %s3085_s6 = int_to_ptr.vmem [resolvable:$true] %s3084_s6 }
  0x4a   : > { %s3086_s7 = scalar_lea.vmem %s3085_s6, 240  ;;  %s3090_s25 = scalar_lea.vmem %s4194_s11, 480 }
  0x4b   : > { %p3087_p9 = scmp.ne.s32.totalorder %s3085_s6, %s3086_s7  ;;  %p3091_p12 = scmp.lt.s32.totalorder %s3085_s6, [#allocation2] }
  0x4c   : > { %p3092_p0 = scmp.lt.s32.totalorder %s3090_s25, %s3086_s7 }
  0x4d   : > { %p3088_p10 = pnand %p3087_p9, %p3353_p13 }
  0x4e   : > { %p3093_p1 = por %p3092_p0, %p3091_p12 }
  0x4f   : > { %p3089_p11 = pneg %p3088_p10 }
  0x51   : > { %p3094_p8 = pnand %p3093_p1, %p3089_p11 }
  0x53   : > { %3097 = shalt.err (!%p3094_p8)  }
  0x54   : > { %2860 = dma.hbm_to_vmem [thread:$0]  (%p3353_p13), %s213_s20, 3840, %s215_s18, %s204_s17 }
  0x55   : > { %s3380_s9 = scalar_lea.vmem [#allocation7], %s3321_s24  ;;  %s3384_s29 = scalar_lea.vmem [#allocation2], %s2726_s28 }
  0x56   : > { %s221_s5 = scalar_lea.sflag [#allocation3], %s4225_s10 }
  0x57   : > { %3162 = dma.done.wait %s221_s5, 3840 }
  0x58   : > { %3163 = vsyncadd %s221_s5, 4294963456  ;;  %v2788_v0 = vld [vmem:[#allocation4 + $0xf8] sm:$0xff]  ;;  %v2787_v1 = vld [vmem:[#allocation4 + $0xf0] sm:$0xff]  ;;  %s2715_s10 = sshll.u32 %s3182_s15, 4  ;;  %s2716_s28 = sshll.u32 %s3186_s16, 5 }
  0x59   : > { %635 = vmatpush.bf16.msra.mxu0 %v2788_v0  ;;  %2829 = vmatpush.bf16.msra.mxu1 %v2788_v0  ;;  %v2786_v2 = vld [vmem:[#allocation4 + $0xe8] sm:$0xff]  ;;  %v2785_v3 = vld [vmem:[#allocation4 + $0xe0] sm:$0xff]  ;;  %v2784_v4 = vld [vmem:[#allocation4 + $0xd8] sm:$0xff]  ;;  %s2149_s20 = sadd.s32 %s2716_s28, %s2715_s10  ;;  %s2152_s15 = sshll.u32 %s3380_s9, 4  ;;  %s2153_s15 = int_to_ptr.vmem [resolvable:$true] %s2152_s15 }
  0x5a   : > { %2830 = vmatpush.bf16.msra.mxu2 %v2788_v0  ;;  %2831 = vmatpush.bf16.msra.mxu3 %v2788_v0  ;;  %v2783_v5 = vld [vmem:[#allocation4 + $0xd0] sm:$0xff]  ;;  %v2782_v6 = vld [vmem:[#allocation4 + $0xc8] sm:$0xff]  ;;  %v2781_v7 = vld [vmem:[#allocation4 + $0xc0] sm:$0xff]  ;;  %s2717_s21 = sshll.u32 %s2149_s20, 3  ;;  %s4207_s23 = sand.u32 1, %s3174_s13  }
  0x5b   : > { %v2276_v8 = vld [vmem:[%s3384_s29 + $0x18] sm:$0xf]  ;;  %v2731_v9 = vld [vmem:[%s3384_s29 + $0x20] sm:$0xf0]  ;;  %v2300_v10 = vld [vmem:[%s3384_s29 + $0x48] sm:$0xf]  ;;  %s2151_s22 = scalar_lea.hbm %s4174_s3, %s2717_s21 }
  0x5c   : > { %v2737_v11 = vld [vmem:[%s3384_s29 + $0x50] sm:$0xf0]  ;;  %v2324_v12 = vld [vmem:[%s3384_s29 + $0x78] sm:$0xf]  ;;  %v2743_v13 = vld [vmem:[%s3384_s29 + $0x80] sm:$0xf0]  ;;  %v3395_v18 = vor.u32 %v2731_v9, %v2276_v8 }
  0x5d   : > { %636 = vmatpush.bf16.msra.mxu0 %v2787_v1  ;;  %2832 = vmatpush.bf16.msra.mxu1 %v2787_v1  ;;  %v2348_v14 = vld [vmem:[%s3384_s29 + $0xa8] sm:$0xf]  ;;  %v2749_v15 = vld [vmem:[%s3384_s29 + $0xb0] sm:$0xf0]  ;;  %v3397_v19 = vor.u32 %v2737_v11, %v2300_v10  ;;  %v3399_v20 = vor.u32 %v2743_v13, %v2324_v12  ;;  %v2288_v36 = vld [vmem:[%s3384_s29 + $0x30] sm:$0xf] }
  0x5e   : > { %2833 = vmatpush.bf16.msra.mxu2 %v2787_v1  ;;  %2834 = vmatpush.bf16.msra.mxu3 %v2787_v1  ;;  %v2804_v16 = vld [vmem:[#allocation4 + $0x178] sm:$0xff]  ;;  %v3401_v21 = vor.u32 %v2749_v15, %v2348_v14  ;;  %v2803_v24 = vld [vmem:[#allocation4 + $0x170] sm:$0xff]  ;;  %v2802_v28 = vld [vmem:[#allocation4 + $0x168] sm:$0xff]  ;;  %s2154_s16 = sshll.u32 %s2151_s22, 4  ;;  %s2138_s6 = scalar_lea.sflag [#allocation6], %s4207_s23  ;;  %s2155_s16 = int_to_ptr.hbm [resolvable:$true] %s2154_s16 }
  0x5f   : > { %v2764_v17 = vld [vmem:[#allocation4 + $0x38] sm:$0xff]  ;;  %v2763_v25 = vld [vmem:[#allocation4 + $0x30] sm:$0xff]  ;;  %v2762_v29 = vld [vmem:[#allocation4 + $0x28] sm:$0xff]  ;;  %s3112_s7 = sshra.s32 %s2155_s16, 4  ;;  %s3118_s5 = scalar_lea.hbm %s4174_s3, 512  ;;  %s3113_s7 = int_to_ptr.hbm [resolvable:$true] %s3112_s7 }
  0x60   : > { %v2796_v22 = vld [vmem:[#allocation4 + $0x138] sm:$0xff]  ;;  %v2795_v26 = vld [vmem:[#allocation4 + $0x130] sm:$0xff]  ;;  %v2794_v30 = vld [vmem:[#allocation4 + $0x128] sm:$0xff]  ;;  %s3114_s11 = scalar_lea.hbm %s3113_s7, 128  ;;  %p3119_p4 = scmp.lt.s32.totalorder %s3113_s7, %s4174_s3 }
  0x61   : > { %637 = vmatpush.bf16.msra.mxu0 %v2786_v2  ;;  %2835 = vmatpush.bf16.msra.mxu1 %v2786_v2  ;;  %v2772_v23 = vld [vmem:[#allocation4 + $0x78] sm:$0xff]  ;;  %v2771_v27 = vld [vmem:[#allocation4 + $0x70] sm:$0xff]  ;;  %v2770_v31 = vld [vmem:[#allocation4 + $0x68] sm:$0xff]  ;;  %p3115_p8 = scmp.ne.s32.totalorder %s3113_s7, %s3114_s11  ;;  %p3120_p5 = scmp.lt.s32.totalorder %s3118_s5, %s3114_s11 }
  0x62   : > { %2836 = vmatpush.bf16.msra.mxu2 %v2786_v2  ;;  %2837 = vmatpush.bf16.msra.mxu3 %v2786_v2  ;;  %v2801_v32 = vld [vmem:[#allocation4 + $0x160] sm:$0xff]  ;;  %v2734_v37 = vld [vmem:[%s3384_s29 + $0x38] sm:$0xf0]  ;;  %v2740_v39 = vld [vmem:[%s3384_s29 + $0x68] sm:$0xf0] }
  0x63   : > { %v2761_v33 = vld [vmem:[#allocation4 + $0x20] sm:$0xff]  ;;  %v2746_v41 = vld [vmem:[%s3384_s29 + $0x98] sm:$0xf0]  ;;  %v2752_v43 = vld [vmem:[%s3384_s29 + $0xc8] sm:$0xf0]  ;;  %v3415_v46 = vor.u32 %v2734_v37, %v2288_v36  ;;  %p3116_p13 = pnand %p3115_p8, %p3278_p3  ;;  %p3121_p6 = por %p3120_p5, %p3119_p4 }
  0x64   : > { %v2793_v34 = vld [vmem:[#allocation4 + $0x120] sm:$0xff]  ;;  %v2800_v44 = vld [vmem:[#allocation4 + $0x158] sm:$0xff]  ;;  %v2799_v52 = vld [vmem:[#allocation4 + $0x150] sm:$0xff] }
  0x65   : > { %638 = vmatpush.bf16.msra.mxu0 %v2785_v3  ;;  %2838 = vmatpush.bf16.msra.mxu1 %v2785_v3  ;;  %v2769_v35 = vld [vmem:[#allocation4 + $0x60] sm:$0xff]  ;;  %v2760_v45 = vld [vmem:[#allocation4 + $0x18] sm:$0xff]  ;;  %v2759_v53 = vld [vmem:[#allocation4 + $0x10] sm:$0xff]  ;;  %p3117_p2 = pneg %p3116_p13 }
  0x66   : > { %2839 = vmatpush.bf16.msra.mxu2 %v2785_v3  ;;  %2840 = vmatpush.bf16.msra.mxu3 %v2785_v3  ;;  %v2312_v38 = vld [vmem:[%s3384_s29 + $0x60] sm:$0xf]  ;;  %v2336_v40 = vld [vmem:[%s3384_s29 + $0x90] sm:$0xf]  ;;  %v2792_v50 = vld [vmem:[#allocation4 + $0x118] sm:$0xff] }
  0x67   : > { %v2360_v42 = vld [vmem:[%s3384_s29 + $0xc0] sm:$0xf]  ;;  %v3417_v47 = vor.u32 %v2740_v39, %v2312_v38  ;;  %v3419_v48 = vor.u32 %v2746_v41, %v2336_v40  ;;  %v2768_v51 = vld [vmem:[#allocation4 + $0x58] sm:$0xff]  ;;  %v2798_v56 = vld [vmem:[#allocation4 + $0x148] sm:$0xff]  ;;  %p3122_p7 = pnand %p3121_p6, %p3117_p2 }
  0x68   : > { %v3421_v49 = vor.u32 %v2752_v43, %v2360_v42  ;;  %v2791_v54 = vld [vmem:[#allocation4 + $0x110] sm:$0xff]  ;;  %v2758_v57 = vld [vmem:[#allocation4 + $0x8] sm:$0xff]  ;;  %v2797_v60 = vld [vmem:[#allocation4 + $0x140] sm:$0xff] }
  0x69   : > { %639 = vmatpush.bf16.msra.mxu0 %v2784_v4  ;;  %2841 = vmatpush.bf16.msra.mxu1 %v2784_v4  ;;  %v2767_v55 = vld [vmem:[#allocation4 + $0x50] sm:$0xff]  ;;  %v2790_v58 = vld [vmem:[#allocation4 + $0x108] sm:$0xff]  ;;  %v2757_v61 = vld [vmem:[#allocation4] sm:$0xff] }
  0x6a   : > { %2842 = vmatpush.bf16.msra.mxu2 %v2784_v4  ;;  %2843 = vmatpush.bf16.msra.mxu3 %v2784_v4  ;;  %v2766_v59 = vld [vmem:[#allocation4 + $0x48] sm:$0xff]  ;;  %v2789_v62 = vld [vmem:[#allocation4 + $0x100] sm:$0xff]  ;;  %v2812_v1 = vld [vmem:[#allocation4 + $0x1b8] sm:$0xff] }
  0x6b   : > { %v2765_v63 = vld [vmem:[#allocation4 + $0x40] sm:$0xff]  ;;  %v2730_v0 = vld [vmem:[%s3384_s29 + $0x1c] sm:$0xf]  ;;  %v2278_v3 = vld [vmem:[%s3384_s29 + $0x24] sm:$0xf0] }
  0x6c   : > { %v2820_v2 = vld [vmem:[#allocation4 + $0x1f8] sm:$0xff]  ;;  %v2284_v4 = vld [vmem:[%s3384_s29 + $0x20] sm:$0xf]  ;;  %v2727_v8 = vld [vmem:[%s3384_s29 + $0x4] sm:$0xf]  ;;  %v2281_v14 = vor.u32 %v2730_v0, %v2278_v3 }
  0x6d   : > { %640 = vmatpush.bf16.msra.mxu0 %v2783_v5  ;;  %2844 = vmatpush.bf16.msra.mxu1 %v2783_v5  ;;  %v2470_v9 = vld [vmem:[%s3384_s29 + $0xc] sm:$0xf0]  ;;  %v2780_v10 = vld [vmem:[#allocation4 + $0xb8] sm:$0xff]  ;;  %v2806_v3 = vld [vmem:[#allocation4 + $0x188] sm:$0xff] }
  0x6e   : > { %2845 = vmatpush.bf16.msra.mxu2 %v2783_v5  ;;  %2846 = vmatpush.bf16.msra.mxu3 %v2783_v5  ;;  %v2732_v5 = vld [vmem:[%s3384_s29 + $0x28] sm:$0xf0]  ;;  %v2811_v12 = vld [vmem:[#allocation4 + $0x1b0] sm:$0xff]  ;;  %v2777_v36 = vld [vmem:[#allocation4 + $0xa0] sm:$0xff] }
  0x6f   : > { %v2828_v11 = vld [vmem:[#allocation4 + $0x238] sm:$0xff]  ;;  %v2819_v13 = vld [vmem:[#allocation4 + $0x1f0] sm:$0xff]  ;;  %v3435_v15 = vor.u32 %v2732_v5, %v2284_v4  ;;  %v2825_v37 = vld [vmem:[#allocation4 + $0x220] sm:$0xff] }
  0x70   : > { %v2736_v38 = vld [vmem:[%s3384_s29 + $0x4c] sm:$0xf]  ;;  %v2302_v39 = vld [vmem:[%s3384_s29 + $0x54] sm:$0xf0]  ;;  %v2308_v40 = vld [vmem:[%s3384_s29 + $0x50] sm:$0xf] }
  0x71   : > { %641 = vmatpush.bf16.msra.mxu0 %v2782_v6  ;;  %2847 = vmatpush.bf16.msra.mxu1 %v2782_v6  ;;  %v2738_v41 = vld [vmem:[%s3384_s29 + $0x58] sm:$0xf0]  ;;  %v3453_v42 = vor.u32 %v2736_v38, %v2302_v39  ;;  %v2744_v0 = vld [vmem:[%s3384_s29 + $0x88] sm:$0xf0]  ;;  %v2368_v38 = vld [vmem:[%s3384_s29 + $0xc8] sm:$0xf] }
  0x72   : > { %2848 = vmatpush.bf16.msra.mxu2 %v2782_v6  ;;  %2849 = vmatpush.bf16.msra.mxu3 %v2782_v6  ;;  %v2468_v6 = vld [vmem:[%s3384_s29] sm:$0xf]  ;;  %v3455_v43 = vor.u32 %v2738_v41, %v2308_v40  ;;  %v2814_v4 = vld [vmem:[#allocation4 + $0x1c8] sm:$0xff]  ;;  %v2753_v39 = vld [vmem:[%s3384_s29 + $0xd0] sm:$0xf0] }
  0x73   : > { %v2774_v5 = vld [vmem:[#allocation4 + $0x88] sm:$0xff] }
  0x75   : > { %642 = vmatpush.bf16.msra.mxu0 %v2781_v7  ;;  %2850 = vmatpush.bf16.msra.mxu1 %v2781_v7 }
  0x76   : > { %2851 = vmatpush.bf16.msra.mxu2 %v2781_v7  ;;  %2852 = vmatpush.bf16.msra.mxu3 %v2781_v7  ;;  %v2728_v7 = vld [vmem:[%s3384_s29 + $0x8] sm:$0xf0] }
  0x78   : > { %643 = vmatmul.bf16.vlgmr.msra.gmra.mxu0 %v3395_v18  ;;  %653 = vmatmul.bf16.vlgmr.msra.gmra.mxu1 %v3397_v19 }
  0x79   : > { %663 = vmatmul.bf16.vlgmr.msra.gmra.mxu2 %v3399_v20  ;;  %673 = vmatmul.bf16.vlgmr.msra.gmra.mxu3 %v3401_v21 }
  0x7a   : > { %733 = vmatpush.bf16.msrb.mxu2 %v2804_v16  ;;  %942 = vmatpush.bf16.msrb.mxu3 %v2764_v17  ;;  %v2469_v16 = vor.u32 %v2728_v7, %v2468_v6  ;;  %v2473_v17 = vor.u32 %v2727_v8, %v2470_v9  ;;  %v2822_v6 = vld [vmem:[#allocation4 + $0x208] sm:$0xff]  ;;  %v2745_v7 = vld [vmem:[%s3384_s29 + $0x94] sm:$0xf]  ;;  %v2338_v8 = vld [vmem:[%s3384_s29 + $0x9c] sm:$0xf0] }
  0x7b   : > { %684 = vmatpush.bf16.msrb.mxu1 %v2796_v22  ;;  %991 = vmatpush.bf16.msrb.mxu0 %v2772_v23  ;;  %v2779_v22 = vld [vmem:[#allocation4 + $0xb0] sm:$0xff]  ;;  %v2344_v9 = vld [vmem:[%s3384_s29 + $0x98] sm:$0xf] }
  0x7c   : > { %v2827_v23 = vld [vmem:[#allocation4 + $0x230] sm:$0xff] }
  0x7e   : > { %734 = vmatpush.bf16.msrb.mxu2 %v2803_v24  ;;  %943 = vmatpush.bf16.msrb.mxu3 %v2763_v25  ;;  %v2810_v24 = vld [vmem:[#allocation4 + $0x1a8] sm:$0xff] }
  0x7f   : > { %685 = vmatpush.bf16.msrb.mxu1 %v2795_v26  ;;  %992 = vmatpush.bf16.msrb.mxu0 %v2771_v27  ;;  %v2818_v25 = vld [vmem:[#allocation4 + $0x1e8] sm:$0xff] }
  0x80   : > { %v2778_v26 = vld [vmem:[#allocation4 + $0xa8] sm:$0xff] }
  0x81   : > { %v2826_v27 = vld [vmem:[#allocation4 + $0x228] sm:$0xff] }
  0x82   : > { %735 = vmatpush.bf16.msrb.mxu2 %v2802_v28  ;;  %944 = vmatpush.bf16.msrb.mxu3 %v2762_v29  ;;  %v2733_v28 = vld [vmem:[%s3384_s29 + $0x34] sm:$0xf]  ;;  %v2290_v29 = vld [vmem:[%s3384_s29 + $0x3c] sm:$0xf0] }
  0x83   : > { %686 = vmatpush.bf16.msrb.mxu1 %v2794_v30  ;;  %993 = vmatpush.bf16.msrb.mxu0 %v2770_v31  ;;  %v2296_v30 = vld [vmem:[%s3384_s29 + $0x38] sm:$0xf]  ;;  %v2735_v31 = vld [vmem:[%s3384_s29 + $0x40] sm:$0xf0] }
  0x86   : > { %736 = vmatpush.bf16.msrb.mxu2 %v2801_v32  ;;  %945 = vmatpush.bf16.msrb.mxu3 %v2761_v33  ;;  %v3442_v32 = vor.u32 %v2733_v28, %v2290_v29  ;;  %v3444_v33 = vor.u32 %v2735_v31, %v2296_v30 }
  0x87   : > { %687 = vmatpush.bf16.msrb.mxu1 %v2793_v34  ;;  %994 = vmatpush.bf16.msrb.mxu0 %v2769_v35  ;;  %v2809_v34 = vld [vmem:[#allocation4 + $0x1a0] sm:$0xff] }
  0x88   : > { %648 = vmatmul.bf16.gmra.mxu0 %v3415_v46  ;;  %658 = vmatmul.bf16.gmra.mxu1 %v3417_v47  ;;  %v2817_v35 = vld [vmem:[#allocation4 + $0x1e0] sm:$0xff] }
  0x89   : > { %668 = vmatmul.bf16.gmra.mxu2 %v3419_v48  ;;  %678 = vmatmul.bf16.gmra.mxu3 %v3421_v49 }
  0x8a   : > { %737 = vmatpush.bf16.msrb.mxu2 %v2800_v44  ;;  %946 = vmatpush.bf16.msrb.mxu3 %v2760_v45  ;;  %v2816_v44 = vld [vmem:[#allocation4 + $0x1d8] sm:$0xff] }
  0x8b   : > { %688 = vmatpush.bf16.msrb.mxu1 %v2792_v50  ;;  %995 = vmatpush.bf16.msrb.mxu0 %v2768_v51  ;;  %v2776_v45 = vld [vmem:[#allocation4 + $0x98] sm:$0xff]  ;;  %v2739_v51 = vld [vmem:[%s3384_s29 + $0x64] sm:$0xf] }
  0x8c   : > { %v2824_v50 = vld [vmem:[#allocation4 + $0x218] sm:$0xff] }
  0x8e   : > { %738 = vmatpush.bf16.msrb.mxu2 %v2799_v52  ;;  %947 = vmatpush.bf16.msrb.mxu3 %v2759_v53  ;;  %v2314_v52 = vld [vmem:[%s3384_s29 + $0x6c] sm:$0xf0]  ;;  %v2320_v53 = vld [vmem:[%s3384_s29 + $0x68] sm:$0xf] }
  0x8f   : > { %689 = vmatpush.bf16.msrb.mxu1 %v2791_v54  ;;  %996 = vmatpush.bf16.msrb.mxu0 %v2767_v55  ;;  %v2741_v54 = vld [vmem:[%s3384_s29 + $0x70] sm:$0xf0]  ;;  %v3465_v55 = vor.u32 %v2739_v51, %v2314_v52 }
  0x92   : > { %739 = vmatpush.bf16.msrb.mxu2 %v2798_v56  ;;  %948 = vmatpush.bf16.msrb.mxu3 %v2758_v57  ;;  %v3467_v56 = vor.u32 %v2741_v54, %v2320_v53  ;;  %v2807_v57 = vld [vmem:[#allocation4 + $0x190] sm:$0xff] }
  0x93   : > { %690 = vmatpush.bf16.msrb.mxu1 %v2790_v58  ;;  %997 = vmatpush.bf16.msrb.mxu0 %v2766_v59  ;;  %v2815_v58 = vld [vmem:[#allocation4 + $0x1d0] sm:$0xff] }
  0x94   : > { %v2775_v59 = vld [vmem:[#allocation4 + $0x90] sm:$0xff] }
  0x96   : > { %740 = vmatpush.bf16.msrb.mxu2 %v2797_v60  ;;  %949 = vmatpush.bf16.msrb.mxu3 %v2757_v61  ;;  %v2823_v60 = vld [vmem:[#allocation4 + $0x210] sm:$0xff]  ;;  %v2742_v61 = vld [vmem:[%s3384_s29 + $0x7c] sm:$0xf] }
  0x97   : > { %691 = vmatpush.bf16.msrb.mxu1 %v2789_v62  ;;  %998 = vmatpush.bf16.msrb.mxu0 %v2765_v63  ;;  %v2326_v62 = vld [vmem:[%s3384_s29 + $0x84] sm:$0xf0]  ;;  %v2332_v63 = vld [vmem:[%s3384_s29 + $0x80] sm:$0xf] }
  0x99   : > { %741 = vmatmul.bf16.vlgmr.msrb.gmra.mxu2 %v3435_v15  ;;  %950 = vmatmul.bf16.vlgmr.msrb.gmra.mxu3 %v2469_v16  ;;  %v2773_v16 = vld [vmem:[#allocation4 + $0x80] sm:$0xff] }
  0x9a   : > { %1298 = vmatpush.bf16.msra.mxu2 %v2812_v1  ;;  %1347 = vmatpush.bf16.msra.mxu3 %v2820_v2  ;;  %v3477_v1 = vor.u32 %v2742_v61, %v2326_v62  ;;  %v3479_v2 = vor.u32 %v2744_v0, %v2332_v63 }
  0x9b   : > { %1040 = vmatpush.bf16.msra.mxu1 %v2780_v10  ;;  %1396 = vmatpush.bf16.msra.mxu0 %v2828_v11  ;;  %v2747_v10 = vld [vmem:[%s3384_s29 + $0xa0] sm:$0xf0]  ;;  %v3489_v11 = vor.u32 %v2745_v7, %v2338_v8 }
  0x9c   : > { %692 = vmatmul.bf16.vlgmr.msrb.gmra.mxu1 %v2281_v14  ;;  %999 = vmatmul.bf16.vlgmr.msrb.gmra.mxu0 %v2473_v17  ;;  %v2821_v17 = vld [vmem:[#allocation4 + $0x200] sm:$0xff] }
  0x9e   : > { %1299 = vmatpush.bf16.msra.mxu2 %v2811_v12  ;;  %1348 = vmatpush.bf16.msra.mxu3 %v2819_v13  ;;  %v3491_v12 = vor.u32 %v2747_v10, %v2344_v9  ;;  %v2805_v13 = vld [vmem:[#allocation4 + $0x180] sm:$0xff] }
  0x9f   : > { %1041 = vmatpush.bf16.msra.mxu1 %v2779_v22  ;;  %1397 = vmatpush.bf16.msra.mxu0 %v2827_v23  ;;  %v2748_v22 = vld [vmem:[%s3384_s29 + $0xac] sm:$0xf]  ;;  %v2350_v23 = vld [vmem:[%s3384_s29 + $0xb4] sm:$0xf0] }
  0xa0   : > { %v3503_v28 = vor.u32 %v2748_v22, %v2350_v23 }
  0xa2   : > { %1300 = vmatpush.bf16.msra.mxu2 %v2810_v24  ;;  %1349 = vmatpush.bf16.msra.mxu3 %v2818_v25  ;;  %v2356_v24 = vld [vmem:[%s3384_s29 + $0xb0] sm:$0xf]  ;;  %v2750_v25 = vld [vmem:[%s3384_s29 + $0xb8] sm:$0xf0] }
  0xa3   : > { %1042 = vmatpush.bf16.msra.mxu1 %v2778_v26  ;;  %1398 = vmatpush.bf16.msra.mxu0 %v2826_v27  ;;  %v3505_v29 = vor.u32 %v2750_v25, %v2356_v24 }
  0xa6   : > { %1301 = vmatpush.bf16.msra.mxu2 %v2809_v34  ;;  %1350 = vmatpush.bf16.msra.mxu3 %v2817_v35 }
  0xa7   : > { %1043 = vmatpush.bf16.msra.mxu1 %v2777_v36  ;;  %1399 = vmatpush.bf16.msra.mxu0 %v2825_v37  ;;  %v2751_v36 = vld [vmem:[%s3384_s29 + $0xc4] sm:$0xf]  ;;  %v2362_v37 = vld [vmem:[%s3384_s29 + $0xcc] sm:$0xf0] }
  0xa9   : > { %746 = vmatmul.bf16.gmra.mxu2 %v3444_v33  ;;  %955 = vmatmul.bf16.gmra.mxu3 %v3395_v18  ;;  %v2808_v18 = vld [vmem:[#allocation4 + $0x198] sm:$0xff] }
  0xaa   : > { %1302 = vmatpush.bf16.msra.mxu2 %v2808_v18  ;;  %1351 = vmatpush.bf16.msra.mxu3 %v2816_v44 }
  0xab   : > { %1044 = vmatpush.bf16.msra.mxu1 %v2776_v45  ;;  %1400 = vmatpush.bf16.msra.mxu0 %v2824_v50  ;;  %v3527_v45 = vor.u32 %v2751_v36, %v2362_v37  ;;  %v3529_v50 = vor.u32 %v2753_v39, %v2368_v38 }
  0xac   : > { %697 = vmatmul.bf16.gmra.mxu1 %v3442_v32  ;;  %1004 = vmatmul.bf16.gmra.mxu0 %v2281_v14  ;;  %v2813_v14 = vld [vmem:[#allocation4 + $0x1c0] sm:$0xff] }
  0xae   : > { %1303 = vmatpush.bf16.msra.mxu2 %v2807_v57  ;;  %1352 = vmatpush.bf16.msra.mxu3 %v2815_v58  ;;  %v2476_v57 = vld [vmem:[%s3384_s29 + $0x8] sm:$0xf]  ;;  %v2729_v58 = vld [vmem:[%s3384_s29 + $0x10] sm:$0xf0] }
  0xaf   : > { %1045 = vmatpush.bf16.msra.mxu1 %v2775_v59  ;;  %1401 = vmatpush.bf16.msra.mxu0 %v2823_v60  ;;  %v2477_v61 = vor.u32 %v2729_v58, %v2476_v57 }
  0xb2   : > { %1304 = vmatpush.bf16.msra.mxu2 %v2806_v3  ;;  %1353 = vmatpush.bf16.msra.mxu3 %v2814_v4 }
  0xb3   : > { %1046 = vmatpush.bf16.msra.mxu1 %v2774_v5  ;;  %1402 = vmatpush.bf16.msra.mxu0 %v2822_v6 }
  0xb6   : > { %1305 = vmatpush.bf16.msra.mxu2 %v2805_v13  ;;  %1354 = vmatpush.bf16.msra.mxu3 %v2813_v14 }
  0xb7   : > { %1047 = vmatpush.bf16.msra.mxu1 %v2773_v16  ;;  %1403 = vmatpush.bf16.msra.mxu0 %v2821_v17 }
  0xb9   : > { %751 = vmatmul.bf16.gmra.mxu2 %v3455_v43  ;;  %960 = vmatmul.bf16.gmra.mxu3 %v3415_v46 }
  0xbc   : > { %702 = vmatmul.bf16.gmra.mxu1 %v3453_v42  ;;  %1009 = vmatmul.bf16.gmra.mxu0 %v3442_v32 }
  0xc9   : > { %756 = vmatmul.bf16.gmra.mxu2 %v3467_v56  ;;  %965 = vmatmul.bf16.gmra.mxu3 %v3397_v19 }
  0xcc   : > { %707 = vmatmul.bf16.gmra.mxu1 %v3465_v55  ;;  %1014 = vmatmul.bf16.gmra.mxu0 %v3453_v42 }
  0xd9   : > { %761 = vmatmul.bf16.gmra.mxu2 %v3479_v2  ;;  %970 = vmatmul.bf16.gmra.mxu3 %v3417_v47 }
  0xdc   : > { %712 = vmatmul.bf16.gmra.mxu1 %v3477_v1  ;;  %1019 = vmatmul.bf16.gmra.mxu0 %v3465_v55 }
  0xe9   : > { %766 = vmatmul.bf16.gmra.mxu2 %v3491_v12  ;;  %975 = vmatmul.bf16.gmra.mxu3 %v3399_v20 }
  0xec   : > { %717 = vmatmul.bf16.gmra.mxu1 %v3489_v11  ;;  %1024 = vmatmul.bf16.gmra.mxu0 %v3477_v1 }
  0xf5   : > { %v644_v26 = vpop.f32.mrf.mxu0  ;;  %v3501_v27 = vpop.f32.mrf.mxu1 }
  0xf9   : > { %771 = vmatmul.bf16.gmra.mxu2 %v3505_v29  ;;  %980 = vmatmul.bf16.gmra.mxu3 %v3419_v48 }
  0xfc   : > { %722 = vmatmul.bf16.gmra.mxu1 %v3503_v28  ;;  %1029 = vmatmul.bf16.gmra.mxu0 %v3489_v11  ;;  %v3511_v30 = vpop.f32.mrf.mxu2  ;;  %v3513_v31 = vpop.f32.mrf.mxu3 }
  0xfd   : > { %v646_v34 = vpop.f32.mrf.mxu0  ;;  %v3515_v35 = vpop.f32.mrf.mxu1 }
 0x104   : > { %v3521_v40 = vpop.f32.mrf.mxu2  ;;  %v3523_v41 = vpop.f32.mrf.mxu3 }
 0x105   : > { %v649_v18 = vpop.f32.mrf.mxu0  ;;  %v3525_v44 = vpop.f32.mrf.mxu1 }
 0x109   : > { %776 = vmatmul.bf16.gmra.mxu2 %v3529_v50  ;;  %985 = vmatmul.bf16.gmra.mxu3 %v3401_v21 }
 0x10c   : > { %727 = vmatmul.bf16.gmra.mxu1 %v3527_v45  ;;  %1034 = vmatmul.bf16.gmra.mxu0 %v3503_v28  ;;  %v3535_v51 = vpop.f32.mrf.mxu2  ;;  %v3537_v52 = vpop.f32.mrf.mxu3 }
 0x10d   : > { %v651_v53 = vpop.f32.mrf.mxu0  ;;  %v3539_v54 = vpop.f32.mrf.mxu1 }
 0x114   : > { %v3543_v59 = vpop.f32.mrf.mxu2  ;;  %v3545_v60 = vpop.f32.mrf.mxu3 }
 0x119   : > { %v693_v62 = vpop.f32.mrf.mxu1  ;;  %v1000_v0 = vpop.f32.mrf.mxu0  ;;  %1306 = vmatmul.bf16.vlgmr.msra.gmra.mxu2 %v3415_v46  ;;  %1355 = vmatmul.bf16.vlgmr.msra.gmra.mxu3 %v3442_v32 }
 0x11a   : > { %v694_v63 = vadd.f32 %v693_v62, %v644_v26 }
 0x11c   : > { %1048 = vmatmul.bf16.vlgmr.msra.gmra.mxu1 %v2477_v61  ;;  %1404 = vmatmul.bf16.vlgmr.msra.gmra.mxu0 %v3444_v33  ;;  %v742_v3 = vpop.f32.mrf.mxu2  ;;  %v951_v5 = vpop.f32.mrf.mxu3 }
 0x11d   : > { %v743_v4 = vadd.f32 %v742_v3, %v694_v63 }
 0x11f   : > { %v952_v7 = vadd.f32 %v951_v5, %v743_v4 }
 0x121   : > { %v695_v6 = vpop.f32.mrf.mxu1  ;;  %v1002_v9 = vpop.f32.mrf.mxu0  ;;  %v3550_v10 = vadd.f32 %v1000_v0, %v952_v7 }
 0x122   : > { %v696_v8 = vadd.f32 %v695_v6, %v646_v34 }
 0x124   : > { %v744_v13 = vpop.f32.mrf.mxu2  ;;  %v953_v16 = vpop.f32.mrf.mxu3 }
 0x125   : > { %v745_v14 = vadd.f32 %v744_v13, %v696_v8 }
 0x127   : > { %v954_v22 = vadd.f32 %v953_v16, %v745_v14 }
 0x129   : > { %v698_v17 = vpop.f32.mrf.mxu1  ;;  %v1005_v46 = vpop.f32.mrf.mxu0  ;;  %1311 = vmatmul.bf16.gmra.mxu2 %v3397_v19  ;;  %v3554_v32 = vadd.f32 %v1002_v9, %v954_v22  ;;  %1360 = vmatmul.bf16.gmra.mxu3 %v3453_v42 }
 0x12a   : > { %v699_v23 = vadd.f32 %v698_v17, %v649_v18 }
 0x12c   : > { %1053 = vmatmul.bf16.gmra.mxu1 %v3435_v15  ;;  %1409 = vmatmul.bf16.gmra.mxu0 %v3455_v43  ;;  %v747_v24 = vpop.f32.mrf.mxu2  ;;  %v956_v26 = vpop.f32.mrf.mxu3 }
 0x12d   : > { %v748_v25 = vadd.f32 %v747_v24, %v699_v23 }
 0x12f   : > { %v957_v36 = vadd.f32 %v956_v26, %v748_v25 }
 0x131   : > { %v700_v34 = vpop.f32.mrf.mxu1  ;;  %v1007_v38 = vpop.f32.mrf.mxu0  ;;  %v3558_v39 = vadd.f32 %v1005_v46, %v957_v36 }
 0x132   : > { %v701_v37 = vadd.f32 %v700_v34, %v651_v53 }
 0x134   : > { %v749_v18 = vpop.f32.mrf.mxu2  ;;  %v958_v15 = vpop.f32.mrf.mxu3 }
 0x135   : > { %v750_v57 = vadd.f32 %v749_v18, %v701_v37 }
 0x137   : > { %v959_v19 = vadd.f32 %v958_v15, %v750_v57 }
 0x139   : > { %v703_v58 = vpop.f32.mrf.mxu1  ;;  %v1010_v62 = vpop.f32.mrf.mxu0  ;;  %1316 = vmatmul.bf16.gmra.mxu2 %v3417_v47  ;;  %v3563_v42 = vadd.f32 %v1007_v38, %v959_v19  ;;  %1365 = vmatmul.bf16.gmra.mxu3 %v3465_v55 }
 0x13a   : > { %v704_v61 = vadd.f32 %v703_v58, %v3501_v27 }
 0x13c   : > { %1058 = vmatmul.bf16.gmra.mxu1 %v3444_v33  ;;  %1414 = vmatmul.bf16.gmra.mxu0 %v3467_v56  ;;  %v752_v53 = vpop.f32.mrf.mxu2  ;;  %v961_v0 = vpop.f32.mrf.mxu3 }
 0x13d   : > { %v753_v63 = vadd.f32 %v752_v53, %v704_v61 }
 0x13f   : > { %v962_v4 = vadd.f32 %v961_v0, %v753_v63 }
 0x141   : > { %v705_v3 = vpop.f32.mrf.mxu1  ;;  %v1012_v6 = vpop.f32.mrf.mxu0  ;;  %v3568_v27 = vadd.f32 %v1010_v62, %v962_v4 }
 0x142   : > { %v706_v5 = vadd.f32 %v705_v3, %v3515_v35 }
 0x144   : > { %v754_v7 = vpop.f32.mrf.mxu2  ;;  %v963_v8 = vpop.f32.mrf.mxu3 }
 0x145   : > { %v755_v33 = vadd.f32 %v754_v7, %v706_v5 }
 0x147   : > { %v964_v9 = vadd.f32 %v963_v8, %v755_v33 }
 0x149   : > { %v708_v47 = vpop.f32.mrf.mxu1  ;;  %v1015_v55 = vpop.f32.mrf.mxu0  ;;  %1321 = vmatmul.bf16.gmra.mxu2 %v3399_v20  ;;  %v3573_v14 = vadd.f32 %v1012_v6, %v964_v9  ;;  %1370 = vmatmul.bf16.gmra.mxu3 %v3477_v1 }
 0x14a   : > { %v709_v13 = vadd.f32 %v708_v47, %v3525_v44 }
 0x14c   : > { %1063 = vmatmul.bf16.gmra.mxu1 %v3455_v43  ;;  %1419 = vmatmul.bf16.gmra.mxu0 %v3479_v2  ;;  %v757_v35 = vpop.f32.mrf.mxu2  ;;  %v966_v17 = vpop.f32.mrf.mxu3 }
 0x14d   : > { %v758_v16 = vadd.f32 %v757_v35, %v709_v13 }
 0x14f   : > { %v967_v23 = vadd.f32 %v966_v17, %v758_v16 }
 0x151   : > { %v710_v22 = vpop.f32.mrf.mxu1  ;;  %v1017_v24 = vpop.f32.mrf.mxu0  ;;  %v3578_v44 = vadd.f32 %v1015_v55, %v967_v23 }
 0x152   : > { %v711_v46 = vadd.f32 %v710_v22, %v3539_v54 }
 0x154   : > { %v759_v25 = vpop.f32.mrf.mxu2  ;;  %v968_v26 = vpop.f32.mrf.mxu3 }
 0x155   : > { %v760_v43 = vadd.f32 %v759_v25, %v711_v46  ;;  %v2755_v46 = vld [vmem:[%s3384_s29 + $0xe0] sm:$0xf0] }
 0x157   : > { %v969_v34 = vadd.f32 %v968_v26, %v760_v43  ;;  %v2578_v43 = vld [vmem:[%s3384_s29 + $0xe4] sm:$0xf0]  ;;  %v2756_v26 = vld [vmem:[%s3384_s29 + $0xe8] sm:$0xf0] }
 0x159   : > { %v713_v20 = vpop.f32.mrf.mxu1  ;;  %v1020_v36 = vpop.f32.mrf.mxu0  ;;  %1326 = vmatmul.bf16.gmra.mxu2 %v3419_v48  ;;  %v3582_v1 = vadd.f32 %v1017_v24, %v969_v34  ;;  %1375 = vmatmul.bf16.gmra.mxu3 %v3489_v11 }
 0x15a   : > { %v714_v54 = vadd.f32 %v713_v20, %v3511_v30 }
 0x15c   : > { %1068 = vmatmul.bf16.gmra.mxu1 %v3467_v56  ;;  %1424 = vmatmul.bf16.gmra.mxu0 %v3491_v12  ;;  %v762_v37 = vpop.f32.mrf.mxu2  ;;  %v971_v18 = vpop.f32.mrf.mxu3 }
 0x15d   : > { %v763_v38 = vadd.f32 %v762_v37, %v714_v54 }
 0x15f   : > { %v972_v15 = vadd.f32 %v971_v18, %v763_v38 }
 0x161   : > { %v715_v57 = vpop.f32.mrf.mxu1  ;;  %v1022_v58 = vpop.f32.mrf.mxu0  ;;  %v3587_v19 = vadd.f32 %v1020_v36, %v972_v15 }
 0x162   : > { %v716_v56 = vadd.f32 %v715_v57, %v3521_v40 }
 0x164   : > { %v764_v61 = vpop.f32.mrf.mxu2  ;;  %v973_v62 = vpop.f32.mrf.mxu3 }
 0x165   : > { %v765_v48 = vadd.f32 %v764_v61, %v716_v56 }
 0x167   : > { %v974_v63 = vadd.f32 %v973_v62, %v765_v48 }
 0x169   : > { %v718_v53 = vpop.f32.mrf.mxu1  ;;  %v1025_v11 = vpop.f32.mrf.mxu0  ;;  %1331 = vmatmul.bf16.gmra.mxu2 %v3401_v21  ;;  %v3592_v30 = vadd.f32 %v1022_v58, %v974_v63  ;;  %1380 = vmatmul.bf16.gmra.mxu3 %v3503_v28 }
 0x16a   : > { %v719_v0 = vadd.f32 %v718_v53, %v3535_v51 }
 0x16c   : > { %1073 = vmatmul.bf16.gmra.mxu1 %v3479_v2  ;;  %1429 = vmatmul.bf16.gmra.mxu0 %v3505_v29  ;;  %v767_v3 = vpop.f32.mrf.mxu2  ;;  %v976_v4 = vpop.f32.mrf.mxu3 }
 0x16d   : > { %v768_v40 = vadd.f32 %v767_v3, %v719_v0 }
 0x16f   : > { %v977_v6 = vadd.f32 %v976_v4, %v768_v40 }
 0x171   : > { %v720_v5 = vpop.f32.mrf.mxu1  ;;  %v1027_v7 = vpop.f32.mrf.mxu0  ;;  %v3597_v33 = vadd.f32 %v1025_v11, %v977_v6 }
 0x172   : > { %v721_v2 = vadd.f32 %v720_v5, %v3543_v59 }
 0x174   : > { %v769_v8 = vpop.f32.mrf.mxu2  ;;  %v978_v47 = vpop.f32.mrf.mxu3 }
 0x175   : > { %v770_v21 = vadd.f32 %v769_v8, %v721_v2 }
 0x177   : > { %v979_v28 = vadd.f32 %v978_v47, %v770_v21 }
 0x179   : > { %v723_v9 = vpop.f32.mrf.mxu1  ;;  %v1030_v13 = vpop.f32.mrf.mxu0  ;;  %1336 = vmatmul.bf16.gmra.mxu2 %v3421_v49  ;;  %v3602_v51 = vadd.f32 %v1027_v7, %v979_v28  ;;  %1385 = vmatmul.bf16.gmra.mxu3 %v3527_v45  ;;  %v2754_v49 = vld [vmem:[%s3384_s29 + $0xdc] sm:$0xf]  ;;  %v2584_v45 = vld [vmem:[%s3384_s29 + $0xe0] sm:$0xf] }
 0x17a   : > { %v724_v59 = vadd.f32 %v723_v9, %v3513_v31  ;;  %v2581_v54 = vor.u32 %v2754_v49, %v2578_v43  ;;  %v2585_v37 = vor.u32 %v2756_v26, %v2584_v45 }
 0x17c   : > { %1078 = vmatmul.bf16.gmra.mxu1 %v3491_v12  ;;  %1434 = vmatmul.bf16.gmra.mxu0 %v3529_v50  ;;  %v772_v55 = vpop.f32.mrf.mxu2  ;;  %v981_v16 = vpop.f32.mrf.mxu3  ;;  %v2576_v12 = vld [vmem:[%s3384_s29 + $0xd8] sm:$0xf] }
 0x17d   : > { %v773_v35 = vadd.f32 %v772_v55, %v724_v59  ;;  %v2577_v31 = vor.u32 %v2755_v46, %v2576_v12 }
 0x17f   : > { %v982_v22 = vadd.f32 %v981_v16, %v773_v35 }
 0x181   : > { %v725_v17 = vpop.f32.mrf.mxu1  ;;  %v1032_v23 = vpop.f32.mrf.mxu0  ;;  %v3610_v24 = vadd.f32 %v1030_v13, %v982_v22 }
 0x182   : > { %v726_v25 = vadd.f32 %v725_v17, %v3523_v41 }
 0x184   : > { %v774_v20 = vpop.f32.mrf.mxu2  ;;  %v983_v34 = vpop.f32.mrf.mxu3 }
 0x185   : > { %v775_v50 = vadd.f32 %v774_v20, %v726_v25 }
 0x187   : > { %v984_v38 = vadd.f32 %v983_v34, %v775_v50 }
 0x189   : > { %v728_v36 = vpop.f32.mrf.mxu1  ;;  %v1035_v18 = vpop.f32.mrf.mxu0  ;;  %1341 = vmatmul.bf16.gmra.mxu2 %v2577_v31  ;;  %1390 = vmatmul.bf16.gmra.mxu3 %v2581_v54  ;;  %v3617_v57 = vadd.f32 %v1032_v23, %v984_v38 }
 0x18a   : > { %v729_v41 = vadd.f32 %v728_v36, %v3537_v52 }
 0x18c   : > { %1083 = vmatmul.bf16.gmra.mxu1 %v3505_v29  ;;  %1439 = vmatmul.bf16.gmra.mxu0 %v2585_v37  ;;  %v777_v15 = vpop.f32.mrf.mxu2  ;;  %v986_v56 = vpop.f32.mrf.mxu3 }
 0x18d   : > { %v778_v58 = vadd.f32 %v777_v15, %v729_v41 }
 0x18f   : > { %v987_v48 = vadd.f32 %v986_v56, %v778_v58 }
 0x191   : > { %v730_v61 = vpop.f32.mrf.mxu1  ;;  %v1037_v62 = vpop.f32.mrf.mxu0  ;;  %v3621_v11 = vadd.f32 %v1035_v18, %v987_v48 }
 0x192   : > { %v731_v53 = vadd.f32 %v730_v61, %v3545_v60  ;;  %v3629_v60 = vld [vmem:[%s4173_s2] ss:$0 sm:$0xff] }
 0x194   : > { %v779_v63 = vpop.f32.mrf.mxu2  ;;  %v988_v29 = vpop.f32.mrf.mxu3 }
 0x195   : > { %v780_v0 = vadd.f32 %v779_v63, %v731_v53 }
 0x197   : > { %v989_v40 = vadd.f32 %v988_v29, %v780_v0 }
 0x199   : > { %v1049_v3 = vpop.f32.mrf.mxu1  ;;  %v1405_v4 = vpop.f32.mrf.mxu0  ;;  %v3623_v7 = vadd.f32 %v1037_v62, %v989_v40 }
 0x19a   : > { %v1050_v2 = vadd.f32 %v1049_v3, %v3550_v10 }
 0x19c   : > { %v1307_v5 = vpop.f32.mrf.mxu2  ;;  %v1356_v6 = vpop.f32.mrf.mxu3 }
 0x19d   : > { %v1357_v52 = vadd.f32 %v1356_v6, %v1307_v5 }
 0x19f   : > { %v1406_v8 = vadd.f32 %v1405_v4, %v1357_v52 }
 0x1a1   : > { %v1051_v21 = vpop.f32.mrf.mxu1  ;;  %v1407_v47 = vpop.f32.mrf.mxu0  ;;  %v1445_v9 = vadd.f32 %v1406_v8, %v1050_v2 }
 0x1a2   : > { %v1052_v16 = vadd.f32 %v1051_v21, %v3554_v32 }
 0x1a3   : > { %v3632_v28 = vadd.f32 %v3629_v60, %v1445_v9 }
 0x1a4   : > { %v1309_v13 = vpop.f32.mrf.mxu2  ;;  %v1358_v59 = vpop.f32.mrf.mxu3 }
 0x1a5   : > { %v3635_v55 = vmul.f32 0.70710677, %v3632_v28  ;;  %v1359_v35 = vadd.f32 %v1358_v59, %v1309_v13 }
 0x1a7   : > { %v1513_v10 = vand.u32 2147483647, %v3635_v55  ;;  %v1408_v17 = vadd.f32 %v1407_v47, %v1359_v35  ;;  %vm2041_vm11 = vcmp.lt.f32.partialorder %v3635_v55, 0.0 }
 0x1a9   : > { %v1529_v22 = vmul.f32 0.3275911, %v1513_v10  ;;  %v1446_v23 = vadd.f32 %v1408_v17, %v1052_v16  ;;  %v1054_v12 = vpop.f32.mrf.mxu1  ;;  %v1410_v46 = vpop.f32.mrf.mxu0  ;;  %v1945_v4 = vsub.f32 0.0, %v1513_v10 }
 0x1aa   : > { %v1055_v32 = vadd.f32 %v1054_v12, %v3558_v39 }
 0x1ab   : > { %v1545_v49 = vadd.f32 1.0, %v1529_v22  ;;  %v3640_v25 = vadd.f32 %v3629_v60, %v1446_v23  ;;  %v1961_v17 = vmul.f32 %v1945_v4, %v1513_v10  ;;  %v3671_v10 = vmul.f32 0.5, %v3632_v28 }
 0x1ac   : > { %v1312_v43 = vpop.f32.mrf.mxu2  ;;  %v1361_v45 = vpop.f32.mrf.mxu3 }
 0x1ad   : > { %2947 = vrcp.f32 %v1545_v49  ;;  %v3643_v26 = vmul.f32 0.70710677, %v3640_v25  ;;  %v1362_v20 = vadd.f32 %v1361_v45, %v1312_v43  ;;  %v1570_v62 = vand.u32 2147483647, %v1545_v49 }
 0x1ae   : > { %v1572_v53 = vand.u32 2147483648, %v1545_v49  ;;  %vm1566_vm1 = vweird.f32 %v1545_v49 }
 0x1af   : > { %v1514_v50 = vand.u32 2147483647, %v3643_v26  ;;  %v1411_v34 = vadd.f32 %v1410_v46, %v1362_v20  ;;  %vm1571_vm3 = vcmp.eq.f32.partialorder %v1570_v62, 8.507059e+37 }
 0x1b0   : > { %v1573_v6 = vor.u32 1.1754944e-38, %v1572_v53 }
 0x1b1   : > { %v1530_v31 = vmul.f32 0.3275911, %v1514_v50  ;;  %v1447_v36 = vadd.f32 %v1411_v34, %v1055_v32  ;;  %v1056_v37 = vpop.f32.mrf.mxu1  ;;  %v1412_v15 = vpop.f32.mrf.mxu0  ;;  %v1946_v52 = vsub.f32 0.0, %v1514_v50 }
 0x1b2   : > { %v1057_v0 = vadd.f32 %v1056_v37, %v3563_v42  ;;  %v1977_v37 = vmul.f32 1.442695, %v1961_v17 }
 0x1b3   : > { %v2948_v54 = vpop.eup %2947  ;;  %v1546_v41 = vadd.f32 1.0, %v1530_v31  ;;  %v3648_v56 = vadd.f32 %v3629_v60, %v1447_v36 }
 0x1b4   : > { %v1314_v38 = vpop.f32.mrf.mxu2  ;;  %v1562_v18 = vmul.f32 %v2948_v54, %v1545_v49  ;;  %v1363_v58 = vpop.f32.mrf.mxu3  ;;  %vm1567_vm0 = vweird.f32 %v2948_v54  ;;  %v1962_v49 = vmul.f32 %v1946_v52, %v1514_v50 }
 0x1b5   : > { %v1364_v61 = vadd.f32 %v1363_v58, %v1314_v38  ;;  %2949 = vrcp.f32 %v1546_v41  ;;  %v3651_v39 = vmul.f32 0.70710677, %v3648_v56  ;;  %vm1568_vm2 = vmor %vm1566_vm1, %vm1567_vm0  ;;  %v1585_v45 = vand.u32 2147483647, %v1546_v41 }
 0x1b6   : > { %v1563_v48 = vsub.f32 1.0, %v1562_v18  ;;  %v1587_v20 = vand.u32 2147483648, %v1546_v41  ;;  %vm1581_vm5 = vweird.f32 %v1546_v41  ;;  %v1979_v62 = vmul.f32 1.442695, %v1962_v49 }
 0x1b7   : > { %v1413_v29 = vadd.f32 %v1412_v15, %v1364_v61  ;;  %v1515_v3 = vand.u32 2147483647, %v3651_v39  ;;  %vm1586_vm7 = vcmp.eq.f32.partialorder %v1585_v45, 8.507059e+37  ;;  %vm2042_vm1 = vcmp.lt.f32.partialorder %v3643_v26, 0.0 }
 0x1b8   : > { %v1564_v63 = vmul.f32 %v2948_v54, %v1563_v48  ;;  %v1588_v48 = vor.u32 1.1754944e-38, %v1587_v20 }
 0x1b9   : > { %v1448_v5 = vadd.f32 %v1413_v29, %v1057_v0  ;;  %v1531_v2 = vmul.f32 0.3275911, %v1515_v3  ;;  %v1059_v23 = vpop.f32.mrf.mxu1  ;;  %v1415_v12 = vpop.f32.mrf.mxu0  ;;  %v1947_v32 = vsub.f32 0.0, %v1515_v3 }
 0x1ba   : > { %v1565_v40 = vadd.f32 %v2948_v54, %v1564_v63  ;;  %v1060_v18 = vadd.f32 %v1059_v23, %v3568_v27 }
 0x1bb   : > { %v2950_v21 = vpop.eup %2949  ;;  %v3656_v9 = vadd.f32 %v3629_v60, %v1448_v5  ;;  %v3660_v35 = vadd.f32 1.0, %v1531_v2  ;;  %v1963_v0 = vmul.f32 %v1947_v32, %v1515_v3  ;;  %v3683_v5 = vmul.f32 0.5, %v3640_v25 }
 0x1bc   : > { %v1317_v8 = vpop.f32.mrf.mxu2  ;;  %v1569_v47 = vsel %vm1568_vm2, %v2948_v54, %v1565_v40  ;;  %v1366_v13 = vpop.f32.mrf.mxu3  ;;  %v1577_v59 = vmul.f32 %v2950_v21, %v1546_v41  ;;  %vm1582_vm4 = vweird.f32 %v2950_v21 }
 0x1bd   : > { %v3658_v42 = vsel %vm1571_vm3, %v1573_v6, %v1569_v47  ;;  %v3664_v22 = vmul.f32 0.70710677, %v3656_v9  ;;  %2951 = vrcp.f32 %v3660_v35  ;;  %v1367_v36 = vadd.f32 %v1366_v13, %v1317_v8  ;;  %vm1583_vm6 = vmor %vm1581_vm5, %vm1582_vm4 }
 0x1be   : > { %v1801_v16 = vmul.f32 1.0614054, %v3658_v42  ;;  %v1578_v46 = vsub.f32 1.0, %v1577_v59  ;;  %2953 = vpow2.f32 %v1977_v37  ;;  %v1600_v52 = vand.u32 2147483647, %v3660_v35 }
 0x1bf   : > { %v3668_v31 = vand.u32 2147483647, %v3664_v22  ;;  %v1416_v15 = vadd.f32 %v1415_v12, %v1367_v36  ;;  %v1602_v8 = vand.u32 2147483648, %v3660_v35  ;;  %v1981_v59 = vmul.f32 1.442695, %v1963_v0 }
 0x1c0   : > { %v2682_v43 = vadd.f32 -1.4531521, %v1801_v16  ;;  %v1579_v34 = vmul.f32 %v2950_v21, %v1578_v46  ;;  %vm1596_vm9 = vweird.f32 %v3660_v35  ;;  %vm3696_vm10 = vcmp.eq.f32.partialorder %v1600_v52, 8.507059e+37 }
 0x1c1   : > { %v1532_v38 = vmul.f32 0.3275911, %v3668_v31  ;;  %v1449_v40 = vadd.f32 %v1416_v15, %v1060_v18  ;;  %v1417_v47 = vpop.f32.mrf.mxu0  ;;  %v1948_v12 = vsub.f32 0.0, %v3668_v31 }
 0x1c2   : > { %v1833_v54 = vmul.f32 %v2682_v43, %v3658_v42  ;;  %v1580_v50 = vadd.f32 %v2950_v21, %v1579_v34  ;;  %v1603_v34 = vor.u32 1.1754944e-38, %v1602_v8 }
 0x1c3   : > { %v2952_v63 = vpop.eup %2951  ;;  %v3676_v29 = vadd.f32 1.0, %v1532_v38  ;;  %v3690_v16 = vadd.f32 %v3629_v60, %v1449_v40 }
 0x1c4   : > { %v1319_v58 = vpop.f32.mrf.mxu2  ;;  %v1849_v61 = vadd.f32 1.4214138, %v1833_v54  ;;  %v1368_v53 = vpop.f32.mrf.mxu3  ;;  %v1584_v28 = vsel %vm1583_vm6, %v2950_v21, %v1580_v50  ;;  %v1592_v27 = vmul.f32 %v2952_v63, %v3660_v35  ;;  %vm1597_vm8 = vweird.f32 %v2952_v63 }
 0x1c5   : > { %v3679_v4 = vsel %vm1586_vm7, %v1588_v48, %v1584_v28  ;;  %2955 = vrcp.f32 %v3676_v29  ;;  %v1061_v21 = vpop.f32.mrf.mxu1  ;;  %v1369_v25 = vadd.f32 %v1368_v53, %v1319_v58  ;;  %v3701_v43 = vmul.f32 0.70710677, %v3690_v16  ;;  %v2954_v45 = vpop.eup %2953  ;;  %vm1598_vm12 = vmor %vm1596_vm9, %vm1597_vm8 }
 0x1c6   : > { %v1865_v41 = vmul.f32 %v1849_v61, %v3658_v42  ;;  %v1802_v6 = vmul.f32 1.0614054, %v3679_v4  ;;  %2957 = vpow2.f32 %v1979_v62  ;;  %v1593_v2 = vsub.f32 1.0, %v1592_v27 }
 0x1c7   : > { %v1418_v36 = vadd.f32 %v1417_v47, %v1369_v25  ;;  %2959 = vpow2.f32 %v1981_v59  ;;  %v1517_v35 = vand.u32 2147483647, %v3701_v43  ;;  %v1062_v18 = vadd.f32 %v1061_v21, %v3573_v14 }
 0x1c8   : > { %v2698_v3 = vadd.f32 -0.28449672, %v1865_v41  ;;  %v2683_v13 = vadd.f32 -1.4531521, %v1802_v6  ;;  %v1594_v23 = vmul.f32 %v2952_v63, %v1593_v2  ;;  %v1964_v62 = vmul.f32 %v1948_v12, %v3668_v31 }
 0x1c9   : > { %v1615_v0 = vand.u32 2147483647, %v3676_v29  ;;  %v1533_v40 = vmul.f32 0.3275911, %v1517_v35  ;;  %v1450_v6 = vadd.f32 %v1418_v36, %v1062_v18  ;;  %v1420_v47 = vpop.f32.mrf.mxu0  ;;  %vm1611_vm14 = vweird.f32 %v3676_v29 }
 0x1ca   : > { %v1897_v17 = vmul.f32 %v2698_v3, %v3658_v42  ;;  %v1834_v46 = vmul.f32 %v2683_v13, %v3679_v4  ;;  %v1595_v32 = vadd.f32 %v2952_v63, %v1594_v23  ;;  %vm2043_vm6 = vcmp.lt.f32.partialorder %v3651_v39, 0.0 }
 0x1cb   : > { %v2956_v50 = vpop.eup %2955  ;;  %v3718_v52 = vadd.f32 1.0, %v1533_v40  ;;  %vm3724_vm15 = vcmp.eq.f32.partialorder %v1615_v0, 8.507059e+37  ;;  %vm2044_vm7 = vcmp.lt.f32.partialorder %v3664_v22, 0.0 }
 0x1cc   : > { %v1913_v20 = vadd.f32 0.2548296, %v1897_v17  ;;  %v1322_v54 = vpop.f32.mrf.mxu2  ;;  %v1371_v37 = vpop.f32.mrf.mxu3  ;;  %v1850_v38 = vadd.f32 1.4214138, %v1834_v46  ;;  %v1599_v61 = vsel %vm1598_vm12, %v2952_v63, %v1595_v32  ;;  %v1607_v48 = vmul.f32 %v2956_v50, %v3676_v29 }
 0x1cd   : > { %v2958_v15 = vpop.eup %2957  ;;  %v3713_v28 = vsel %vm3696_vm10, %v1603_v34, %v1599_v61  ;;  %v1617_v63 = vand.u32 2147483648, %v3676_v29  ;;  %v1372_v31 = vadd.f32 %v1371_v37, %v1322_v54  ;;  %vm1612_vm13 = vweird.f32 %v2956_v50  ;;  %v1064_v21 = vpop.f32.mrf.mxu1 }
 0x1ce   : > { %v1929_v58 = vmul.f32 %v1913_v20, %v3658_v42  ;;  %v1866_v53 = vmul.f32 %v1850_v38, %v3679_v4  ;;  %v1803_v14 = vmul.f32 1.0614054, %v3713_v28  ;;  %v1608_v27 = vsub.f32 1.0, %v1607_v48  ;;  %v3720_v13 = vpop.eup %2959  ;;  %vm1613_vm0 = vmor %vm1611_vm14, %vm1612_vm13 }
 0x1cf   : > { %2961 = vrcp.f32 %v3718_v52  ;;  %v3731_v46 = vadd.f32 %v3629_v60, %v1450_v6  ;;  %v1065_v20 = vadd.f32 %v1064_v21, %v3578_v44  ;;  %v1421_v32 = vadd.f32 %v1420_v47, %v1372_v31 }
 0x1d0   : > { %v2009_v41 = vmul.f32 %v2954_v45, %v1929_v58  ;;  %v2699_v42 = vadd.f32 -0.28449672, %v1866_v53  ;;  %v2684_v2 = vadd.f32 -1.4531521, %v1803_v14  ;;  %v1609_v8 = vmul.f32 %v2956_v50, %v1608_v27 }
 0x1d1   : > { %v1618_v45 = vor.u32 1.1754944e-38, %v1617_v63  ;;  %v1949_v54 = vsub.f32 0.0, %v1517_v35  ;;  %v1983_v44 = vmul.f32 1.442695, %v1964_v62  ;;  %v3745_v53 = vmul.f32 0.70710677, %v3731_v46  ;;  %v1422_v47 = vpop.f32.mrf.mxu0 }
 0x1d2   : > { %v2025_v3 = vsub.f32 1.0, %v2009_v41  ;;  %v1898_v59 = vmul.f32 %v2699_v42, %v3679_v4  ;;  %v1835_v23 = vmul.f32 %v2684_v2, %v3713_v28  ;;  %v1610_v12 = vadd.f32 %v2956_v50, %v1609_v8 }
 0x1d3   : > { %v1965_v62 = vmul.f32 %v1949_v54, %v1517_v35  ;;  %vm1626_vm2 = vweird.f32 %v3718_v52  ;;  %v1518_v31 = vand.u32 2147483647, %v3745_v53  ;;  %v1632_v8 = vand.u32 2147483648, %v3718_v52 }
 0x1d4   : > { %v2057_v17 = vsub.f32 0.0, %v2025_v3  ;;  %v1914_v49 = vadd.f32 0.2548296, %v1898_v59  ;;  %v1851_v34 = vadd.f32 1.4214138, %v1835_v23  ;;  %v1614_v36 = vsel %vm1613_vm0, %v2956_v50, %v1610_v12  ;;  %v1324_v37 = vpop.f32.mrf.mxu2  ;;  %v1373_v38 = vpop.f32.mrf.mxu3 }
 0x1d5   : > { %v3740_v61 = vsel %vm3724_vm15, %v1618_v45, %v1614_v36  ;;  %v1451_v50 = vadd.f32 %v1421_v32, %v1065_v20  ;;  %v2962_v0 = vpop.eup %2961  ;;  %v1374_v14 = vadd.f32 %v1373_v38, %v1324_v37  ;;  %v1066_v21 = vpop.f32.mrf.mxu1  ;;  %v1534_v25 = vmul.f32 0.3275911, %v1518_v31 }
 0x1d6   : > { %v2073_v29 = vsel %vm2041_vm11, %v2057_v17, %v2025_v3  ;;  %v1930_v58 = vmul.f32 %v1914_v49, %v3679_v4  ;;  %v1867_v48 = vmul.f32 %v1851_v34, %v3713_v28  ;;  %v1804_v55 = vmul.f32 1.0614054, %v3740_v61 }
 0x1d7   : > { %v2089_v18 = vadd.f32 1.0, %v2073_v29  ;;  %v1630_v4 = vand.u32 2147483647, %v3718_v52  ;;  %v1622_v42 = vmul.f32 %v2962_v0, %v3718_v52  ;;  %v3754_v3 = vadd.f32 %v3629_v60, %v1451_v50 }
 0x1d8   : > { %v2010_v41 = vmul.f32 %v2958_v15, %v1930_v58  ;;  %v2700_v27 = vadd.f32 -0.28449672, %v1867_v48  ;;  %v2685_v6 = vadd.f32 -1.4531521, %v1804_v55  ;;  %v1423_v17 = vadd.f32 %v1422_v47, %v1374_v14 }
 0x1d9   : > { %v2105_v40 = vmul.f32 %v2089_v18, %v3671_v10  ;;  %v1623_v2 = vsub.f32 1.0, %v1622_v42  ;;  %vm3759_vm3 = vcmp.eq.f32.partialorder %v1630_v4, 8.507059e+37  ;;  %vm1627_vm4 = vweird.f32 %v2962_v0 }
 0x1da   : > { %v2026_v63 = vsub.f32 1.0, %v2010_v41  ;;  %v1899_v10 = vmul.f32 %v2700_v27, %v3713_v28  ;;  %v1836_v15 = vmul.f32 %v2685_v6, %v3740_v61  ;;  %v3765_v20 = vadd.f32 1.0, %v1534_v25  ;;  %vm1628_vm5 = vmor %vm1626_vm2, %vm1627_vm4 }
 0x1db   : > { %2121 = vst [vmem:[%s3380_s9] sm:$0xff] %v2105_v40  ;;  %v1624_v49 = vmul.f32 %v2962_v0, %v1623_v2  ;;  %v3768_v32 = vmul.f32 0.70710677, %v3754_v3  ;;  %v1067_v29 = vadd.f32 %v1066_v21, %v3582_v1  ;;  %v1633_v38 = vor.u32 1.1754944e-38, %v1632_v8 }
 0x1dc   : > { %v2058_v59 = vsub.f32 0.0, %v2026_v63  ;;  %v1915_v23 = vadd.f32 0.2548296, %v1899_v10  ;;  %v1852_v12 = vadd.f32 1.4214138, %v1836_v15  ;;  %2963 = vrcp.f32 %v3765_v20  ;;  %v1327_v6 = vpop.f32.mrf.mxu2  ;;  %v1376_v42 = vpop.f32.mrf.mxu3 }
 0x1dd   : > { %v1625_v37 = vadd.f32 %v2962_v0, %v1624_v49  ;;  %v1985_v26 = vmul.f32 1.442695, %v1965_v62  ;;  %v1452_v18 = vadd.f32 %v1423_v17, %v1067_v29  ;;  %2965 = vpow2.f32 %v1983_v44 }
 0x1de   : > { %v2074_v45 = vsel %vm2042_vm1, %v2058_v59, %v2026_v63  ;;  %v1931_v36 = vmul.f32 %v1915_v23, %v3713_v28  ;;  %v1868_v54 = vmul.f32 %v1852_v12, %v3740_v61  ;;  %v1950_v50 = vsub.f32 0.0, %v1518_v31 }
 0x1df   : > { %v2090_v34 = vadd.f32 1.0, %v2074_v45  ;;  %v1629_v55 = vsel %vm1628_vm5, %v2962_v0, %v1625_v37  ;;  %v1519_v4 = vand.u32 2147483647, %v3768_v32  ;;  %v3792_v44 = vadd.f32 %v3629_v60, %v1452_v18  ;;  %v1069_v45 = vpop.f32.mrf.mxu1  ;;  %v1425_v37 = vpop.f32.mrf.mxu0 }
 0x1e0   : > { %v2011_v48 = vmul.f32 %v3720_v13, %v1931_v36  ;;  %v2701_v1 = vadd.f32 -0.28449672, %v1868_v54  ;;  %v3780_v28 = vsel %vm3759_vm3, %v1633_v38, %v1629_v55  ;;  %v3789_v13 = vmul.f32 0.5, %v3656_v9 }
 0x1e1   : > { %v2106_v58 = vmul.f32 %v2090_v34, %v3683_v5  ;;  %v1805_v41 = vmul.f32 1.0614054, %v3780_v28  ;;  %v1483_v5 = vmul.f32 0.5, %v3648_v56  ;;  %2967 = vpow2.f32 %v1985_v26 }
 0x1e2   : > { %v2027_v52 = vsub.f32 1.0, %v2011_v48  ;;  %v1900_v40 = vmul.f32 %v2701_v1, %v3740_v61  ;;  %v2964_v62 = vpop.eup %2963  ;;  %v1645_v63 = vand.u32 2147483647, %v3765_v20  ;;  %v1966_v56 = vmul.f32 %v1950_v50, %v1518_v31 }
 0x1e3   : > { %2122 = vst [vmem:[%s3380_s9 + $0x8] sm:$0xff] %v2106_v58  ;;  %v2686_v27 = vadd.f32 -1.4531521, %v1805_v41  ;;  %v1535_v10 = vmul.f32 0.3275911, %v1519_v4  ;;  %v1637_v8 = vmul.f32 %v2964_v62, %v3765_v20  ;;  %v2966_v21 = vpop.eup %2965  ;;  %v1647_v59 = vand.u32 2147483648, %v3765_v20 }
 0x1e4   : > { %v2059_v0 = vsub.f32 0.0, %v2027_v52  ;;  %v1916_v14 = vadd.f32 0.2548296, %v1900_v40  ;;  %v3797_v39 = vmul.f32 0.70710677, %v3792_v44  ;;  %v1377_v25 = vadd.f32 %v1376_v42, %v1327_v6  ;;  %v1329_v42 = vpop.f32.mrf.mxu2 }
 0x1e5   : > { %v1837_v2 = vmul.f32 %v2686_v27, %v3780_v28  ;;  %v3803_v35 = vadd.f32 1.0, %v1535_v10  ;;  %v1638_v23 = vsub.f32 1.0, %v1637_v8  ;;  %vm1641_vm8 = vweird.f32 %v3765_v20 }
 0x1e6   : > { %v2075_v9 = vsel %vm2043_vm6, %v2059_v0, %v2027_v52  ;;  %v1932_v15 = vmul.f32 %v1916_v14, %v3740_v61  ;;  %v3806_v12 = vand.u32 2147483647, %v3797_v39  ;;  %v1951_v61 = vsub.f32 0.0, %v1519_v4 }
 0x1e7   : > { %v2091_v47 = vadd.f32 1.0, %v2075_v9  ;;  %v1853_v17 = vadd.f32 1.4214138, %v1837_v2  ;;  %2969 = vrcp.f32 %v3803_v35  ;;  %v2968_v29 = vpop.eup %2967  ;;  %v1639_v54 = vmul.f32 %v2964_v62, %v1638_v23 }
 0x1e8   : > { %v2012_v31 = vmul.f32 %v2966_v21, %v1932_v15  ;;  %vm1642_vm9 = vweird.f32 %v2964_v62  ;;  %vm3812_vm10 = vcmp.eq.f32.partialorder %v1645_v63, 8.507059e+37  ;;  %v1648_v26 = vor.u32 1.1754944e-38, %v1647_v59  ;;  %v1378_v63 = vpop.f32.mrf.mxu3 }
 0x1e9   : > { %v2107_v49 = vmul.f32 %v2091_v47, %v1483_v5  ;;  %v1869_v36 = vmul.f32 %v1853_v17, %v3780_v28  ;;  %v1536_v18 = vmul.f32 0.3275911, %v3806_v12  ;;  %v1426_v58 = vadd.f32 %v1425_v37, %v1377_v25  ;;  %vm1643_vm11 = vmor %vm1641_vm8, %vm1642_vm9 }
 0x1ea   : > { %v2028_v34 = vsub.f32 1.0, %v2012_v31  ;;  %v1640_v55 = vadd.f32 %v2964_v62, %v1639_v54  ;;  %v1070_v50 = vadd.f32 %v1069_v45, %v3587_v19  ;;  %v1987_v52 = vmul.f32 1.442695, %v1966_v56 }
 0x1eb   : > { %2123 = vst [vmem:[%s3380_s9 + $0x10] sm:$0xff] %v2107_v49  ;;  %v2702_v1 = vadd.f32 -0.28449672, %v1869_v36  ;;  %v1660_v40 = vand.u32 2147483647, %v3803_v35  ;;  %v1967_v41 = vmul.f32 %v1951_v61, %v1519_v4  ;;  %v3821_v5 = vadd.f32 1.0, %v1536_v18 }
 0x1ec   : > { %v2060_v48 = vsub.f32 0.0, %v2028_v34  ;;  %v1644_v27 = vsel %vm1643_vm11, %v2964_v62, %v1640_v55  ;;  %v1453_v6 = vadd.f32 %v1426_v58, %v1070_v50  ;;  %v1662_v4 = vand.u32 2147483648, %v3803_v35 }
 0x1ed   : > { %v1901_v14 = vmul.f32 %v2702_v1, %v3780_v28  ;;  %v2970_v10 = vpop.eup %2969  ;;  %v3828_v20 = vsel %vm3812_vm10, %v1648_v26, %v1644_v27  ;;  %2971 = vrcp.f32 %v3821_v5  ;;  %v1485_v15 = vmul.f32 0.5, %v3690_v16 }
 0x1ee   : > { %v2076_v0 = vsel %vm2044_vm7, %v2060_v48, %v2028_v34  ;;  %v1806_v22 = vmul.f32 1.0614054, %v3828_v20  ;;  %v1652_v9 = vmul.f32 %v2970_v10, %v3803_v35  ;;  %vm2045_vm12 = vcmp.lt.f32.partialorder %v3701_v43, 0.0  ;;  %v1427_v34 = vpop.f32.mrf.mxu0 }
 0x1ef   : > { %v2092_v19 = vadd.f32 1.0, %v2076_v0  ;;  %v1917_v56 = vadd.f32 0.2548296, %v1901_v14  ;;  %2973 = vpow2.f32 %v1987_v52  ;;  %v3839_v47 = vadd.f32 %v3629_v60, %v1453_v6 }
 0x1f0   : > { %v2687_v8 = vadd.f32 -1.4531521, %v1806_v22  ;;  %v1653_v21 = vsub.f32 1.0, %v1652_v9  ;;  %vm1656_vm13 = vweird.f32 %v3803_v35  ;;  %vm3843_vm14 = vcmp.eq.f32.partialorder %v1660_v40, 8.507059e+37  ;;  %v1381_v0 = vpop.f32.mrf.mxu3 }
 0x1f1   : > { %v2108_v62 = vmul.f32 %v2092_v19, %v3789_v13  ;;  %v1933_v2 = vmul.f32 %v1917_v56, %v3780_v28  ;;  %v1663_v13 = vor.u32 1.1754944e-38, %v1662_v4  ;;  %v3847_v25 = vmul.f32 1.442695, %v1967_v41  ;;  %v1071_v28 = vpop.f32.mrf.mxu1  ;;  %v1332_v41 = vpop.f32.mrf.mxu2 }
 0x1f2   : > { %v1838_v31 = vmul.f32 %v2687_v8, %v3828_v20  ;;  %v1654_v17 = vmul.f32 %v2970_v10, %v1653_v21  ;;  %vm1657_vm15 = vweird.f32 %v2970_v10  ;;  %v1675_v49 = vand.u32 2147483647, %v3821_v5 }
 0x1f3   : > { %2124 = vst [vmem:[%s3380_s9 + $0x18] sm:$0xff] %v2108_v62  ;;  %v2013_v16 = vmul.f32 %v2968_v29, %v1933_v2  ;;  %v2972_v23 = vpop.eup %2971  ;;  %v1952_v61 = vsub.f32 0.0, %v3806_v12  ;;  %v3853_v45 = vmul.f32 0.70710677, %v3839_v47  ;;  %v1379_v36 = vadd.f32 %v1378_v63, %v1329_v42  ;;  %vm1658_vm0 = vmor %vm1656_vm13, %vm1657_vm15 }
 0x1f4   : > { %v1854_v37 = vadd.f32 1.4214138, %v1838_v31  ;;  %v1655_v38 = vadd.f32 %v2970_v10, %v1654_v17  ;;  %v1667_v29 = vmul.f32 %v2972_v23, %v3821_v5  ;;  %v1677_v18 = vand.u32 2147483648, %v3821_v5 }
 0x1f5   : > { %v2029_v54 = vsub.f32 1.0, %v2013_v16  ;;  %v2974_v26 = vpop.eup %2973  ;;  %v1521_v58 = vand.u32 2147483647, %v3853_v45  ;;  %v1072_v48 = vadd.f32 %v1071_v28, %v3592_v30  ;;  %v1428_v1 = vadd.f32 %v1427_v34, %v1379_v36 }
 0x1f6   : > { %v1870_v50 = vmul.f32 %v1854_v37, %v3828_v20  ;;  %v1659_v52 = vsel %vm1658_vm0, %v2970_v10, %v1655_v38  ;;  %v1668_v40 = vsub.f32 1.0, %v1667_v29  ;;  %vm1672_vm1 = vweird.f32 %v2972_v23  ;;  %v1430_v31 = vpop.f32.mrf.mxu0 }
 0x1f7   : > { %v2061_v55 = vsub.f32 0.0, %v2029_v54  ;;  %v3864_v14 = vsel %vm3843_vm14, %v1663_v13, %v1659_v52  ;;  %v1537_v35 = vmul.f32 0.3275911, %v1521_v58  ;;  %v1454_v27 = vadd.f32 %v1428_v1, %v1072_v48 }
 0x1f8   : > { %v2703_v42 = vadd.f32 -0.28449672, %v1870_v50  ;;  %v1807_v30 = vmul.f32 1.0614054, %v3864_v14  ;;  %v1669_v63 = vmul.f32 %v2972_v23, %v1668_v40  ;;  %vm1671_vm2 = vweird.f32 %v3821_v5  ;;  %v1383_v29 = vpop.f32.mrf.mxu3 }
 0x1f9   : > { %v2077_v6 = vsel %vm2045_vm12, %v2061_v55, %v2029_v54  ;;  %v1968_v10 = vmul.f32 %v1952_v61, %v3806_v12  ;;  %v3871_v4 = vadd.f32 1.0, %v1537_v35  ;;  %v1678_v62 = vor.u32 1.1754944e-38, %v1677_v18  ;;  %vm1673_vm3 = vmor %vm1671_vm2, %vm1672_vm1  ;;  %v1074_v59 = vpop.f32.mrf.mxu1  ;;  %v1334_v38 = vpop.f32.mrf.mxu2 }
 0x1fa   : > { %v2093_v19 = vadd.f32 1.0, %v2077_v6  ;;  %v1902_v56 = vmul.f32 %v2703_v42, %v3828_v20  ;;  %v2688_v22 = vadd.f32 -1.4531521, %v1807_v30  ;;  %v1670_v9 = vadd.f32 %v2972_v23, %v1669_v63 }
 0x1fb   : > { %2975 = vrcp.f32 %v3871_v4  ;;  %v3877_v43 = vadd.f32 %v3629_v60, %v1454_v27  ;;  %v1382_v8 = vadd.f32 %v1381_v0, %v1332_v41  ;;  %vm1676_vm4 = vcmp.eq.f32.partialorder %v1675_v49, 8.507059e+37 }
 0x1fc   : > { %v2109_v2 = vmul.f32 %v2093_v19, %v1485_v15  ;;  %v1918_v5 = vadd.f32 0.2548296, %v1902_v56  ;;  %v1839_v12 = vmul.f32 %v2688_v22, %v3864_v14  ;;  %v1674_v21 = vsel %vm1673_vm3, %v2972_v23, %v1670_v9 }
 0x1fd   : > { %v3881_v13 = vsel %vm1676_vm4, %v1678_v62, %v1674_v21  ;;  %v1991_v16 = vmul.f32 1.442695, %v1968_v10  ;;  %v1953_v61 = vsub.f32 0.0, %v1521_v58  ;;  %v3886_v34 = vmul.f32 0.70710677, %v3877_v43 }
 0x1fe   : > { %2125 = vst [vmem:[%s3380_s9 + $0x20] sm:$0xff] %v2109_v2  ;;  %v1934_v15 = vmul.f32 %v1918_v5, %v3828_v20  ;;  %v1855_v17 = vadd.f32 1.4214138, %v1839_v12  ;;  %v1808_v28 = vmul.f32 1.0614054, %v3881_v13  ;;  %v1075_v36 = vadd.f32 %v1074_v59, %v3597_v33 }
 0x1ff   : > { %v1431_v54 = vadd.f32 %v1430_v31, %v1382_v8  ;;  %2977 = vpow2.f32 %v3847_v25  ;;  %vm2046_vm5 = vcmp.lt.f32.partialorder %v3745_v53, 0.0  ;;  %v3893_v20 = vand.u32 2147483647, %v3886_v34  ;;  %v1432_v8 = vpop.f32.mrf.mxu0 }
 0x200   : > { %v2014_v23 = vmul.f32 %v2974_v26, %v1934_v15  ;;  %v1871_v49 = vmul.f32 %v1855_v17, %v3864_v14  ;;  %v2689_v37 = vadd.f32 -1.4531521, %v1808_v28  ;;  %2979 = vpow2.f32 %v1991_v16 }
 0x201   : > { %v2976_v18 = vpop.eup %2975  ;;  %v1455_v48 = vadd.f32 %v1431_v54, %v1075_v36  ;;  %v1690_v50 = vand.u32 2147483647, %v3871_v4  ;;  %v1969_v25 = vmul.f32 %v1953_v61, %v1521_v58  ;;  %v1538_v52 = vmul.f32 0.3275911, %v3893_v20  ;;  %v1076_v22 = vpop.f32.mrf.mxu1 }
 0x202   : > { %v2030_v1 = vsub.f32 1.0, %v2014_v23  ;;  %v2704_v55 = vadd.f32 -0.28449672, %v1871_v49  ;;  %v1840_v33 = vmul.f32 %v2689_v37, %v3881_v13  ;;  %v1682_v26 = vmul.f32 %v2976_v18, %v3871_v4  ;;  %v1337_v28 = vpop.f32.mrf.mxu2  ;;  %v1386_v61 = vpop.f32.mrf.mxu3 }
 0x203   : > { %v3900_v40 = vadd.f32 %v3629_v60, %v1455_v48  ;;  %vm1687_vm6 = vweird.f32 %v2976_v18  ;;  %v1692_v6 = vand.u32 2147483648, %v3871_v4  ;;  %v3904_v42 = vadd.f32 1.0, %v1538_v52 }
 0x204   : > { %v2062_v41 = vsub.f32 0.0, %v2030_v1  ;;  %v1903_v0 = vmul.f32 %v2704_v55, %v3864_v14  ;;  %v1856_v35 = vadd.f32 1.4214138, %v1840_v33  ;;  %v1683_v27 = vsub.f32 1.0, %v1682_v26 }
 0x205   : > { %v3907_v30 = vmul.f32 0.70710677, %v3900_v40  ;;  %v2978_v63 = vpop.eup %2977  ;;  %v1486_v62 = vmul.f32 0.5, %v3731_v46  ;;  %vm1686_vm7 = vweird.f32 %v3871_v4  ;;  %2981 = vrcp.f32 %v3904_v42 }
 0x206   : > { %v2078_v58 = vsel %vm2046_vm5, %v2062_v41, %v2030_v1  ;;  %v1919_v19 = vadd.f32 0.2548296, %v1903_v0  ;;  %v1872_v10 = vmul.f32 %v1856_v35, %v3881_v13  ;;  %v1684_v56 = vmul.f32 %v2976_v18, %v1683_v27  ;;  %v2980_v9 = vpop.eup %2979  ;;  %vm1688_vm8 = vmor %vm1686_vm7, %vm1687_vm6 }
 0x207   : > { %v2094_v2 = vadd.f32 1.0, %v2078_v58  ;;  %v1993_v21 = vmul.f32 1.442695, %v1969_v25  ;;  %v1693_v16 = vor.u32 1.1754944e-38, %v1692_v6  ;;  %v3918_v31 = vand.u32 2147483647, %v3907_v30 }
 0x208   : > { %v1935_v5 = vmul.f32 %v1919_v19, %v3864_v14  ;;  %v2705_v12 = vadd.f32 -0.28449672, %v1872_v10  ;;  %v1685_v53 = vadd.f32 %v2976_v18, %v1684_v56  ;;  %v1384_v46 = vadd.f32 %v1383_v29, %v1334_v38 }
 0x209   : > { %v2110_v59 = vmul.f32 %v2094_v2, %v1486_v62  ;;  %vm1691_vm9 = vcmp.eq.f32.partialorder %v1690_v50, 8.507059e+37  ;;  %v1487_v14 = vmul.f32 0.5, %v3754_v3  ;;  %vm2047_vm10 = vcmp.lt.f32.partialorder %v3768_v32, 0.0  ;;  %v1079_v35 = vpop.f32.mrf.mxu1 }
 0x20a   : > { %v2015_v15 = vmul.f32 %v2978_v63, %v1935_v5  ;;  %v1904_v4 = vmul.f32 %v2705_v12, %v3881_v13  ;;  %v1689_v17 = vsel %vm1688_vm8, %v2976_v18, %v1685_v53  ;;  %v1539_v54 = vmul.f32 0.3275911, %v3918_v31  ;;  %v1435_v63 = vpop.f32.mrf.mxu0  ;;  %v1339_v12 = vpop.f32.mrf.mxu2 }
 0x20b   : > { %2126 = vst [vmem:[%s3380_s9 + $0x28] sm:$0xff] %v2110_v59  ;;  %v3924_v36 = vsel %vm1691_vm9, %v1693_v16, %v1689_v17  ;;  %v1488_v49 = vmul.f32 0.5, %v3792_v44  ;;  %v2982_v29 = vpop.eup %2981  ;;  %vm2048_vm11 = vcmp.lt.f32.partialorder %v3797_v39, 0.0  ;;  %2983 = vpow2.f32 %v1993_v21  ;;  %v1388_v53 = vpop.f32.mrf.mxu3 }
 0x20c   : > { %v2031_v23 = vsub.f32 1.0, %v2015_v15  ;;  %v1920_v37 = vadd.f32 0.2548296, %v1904_v4  ;;  %v1809_v38 = vmul.f32 1.0614054, %v3924_v36  ;;  %v3930_v18 = vadd.f32 1.0, %v1539_v54 }
 0x20d   : > { %v1433_v48 = vadd.f32 %v1432_v8, %v1384_v46  ;;  %v1697_v33 = vmul.f32 %v2982_v29, %v3904_v42  ;;  %v1954_v26 = vsub.f32 0.0, %v3893_v20  ;;  %v1077_v44 = vadd.f32 %v1076_v22, %v3602_v51 }
 0x20e   : > { %v2063_v3 = vsub.f32 0.0, %v2031_v23  ;;  %v1936_v1 = vmul.f32 %v1920_v37, %v3881_v13  ;;  %v2690_v55 = vadd.f32 -1.4531521, %v1809_v38  ;;  %2985 = vrcp.f32 %v3930_v18  ;;  %v3966_v37 = vld [vmem:[%s4173_s2] ss:$0 sm:$0xff] }
 0x20f   : > { %v1387_v50 = vadd.f32 %v1386_v61, %v1337_v28  ;;  %v1698_v0 = vsub.f32 1.0, %v1697_v33  ;;  %vm1702_vm12 = vweird.f32 %v2982_v29  ;;  %v1705_v13 = vand.u32 2147483647, %v3904_v42 }
 0x210   : > { %v2079_v25 = vsel %vm2047_vm10, %v2063_v3, %v2031_v23  ;;  %v2016_v52 = vmul.f32 %v2980_v9, %v1936_v1  ;;  %v1841_v41 = vmul.f32 %v2690_v55, %v3924_v36  ;;  %v1707_v6 = vand.u32 2147483648, %v3904_v42 }
 0x211   : > { %v2095_v27 = vadd.f32 1.0, %v2079_v25  ;;  %v1699_v51 = vmul.f32 %v2982_v29, %v1698_v0  ;;  %v1456_v10 = vadd.f32 %v1433_v48, %v1077_v44  ;;  %v2984_v56 = vpop.eup %2983  ;;  %vm1701_vm13 = vweird.f32 %v3904_v42  ;;  %v1081_v33 = vpop.f32.mrf.mxu1 }
 0x212   : > { %v2032_v58 = vsub.f32 1.0, %v2016_v52  ;;  %v1857_v19 = vadd.f32 1.4214138, %v1841_v41  ;;  %v1080_v22 = vadd.f32 %v1079_v35, %v3610_v24  ;;  %v1436_v9 = vadd.f32 %v1435_v63, %v1387_v50  ;;  %vm1703_vm14 = vmor %vm1701_vm13, %vm1702_vm12  ;;  %v1437_v50 = vpop.f32.mrf.mxu0 }
 0x213   : > { %v2111_v32 = vmul.f32 %v2095_v27, %v1487_v14  ;;  %v1700_v8 = vadd.f32 %v2982_v29, %v1699_v51  ;;  %v3946_v5 = vadd.f32 %v3629_v60, %v1456_v10  ;;  %vm1706_vm15 = vcmp.eq.f32.partialorder %v1705_v13, 8.507059e+37 }
 0x214   : > { %v2064_v62 = vsub.f32 0.0, %v2032_v58  ;;  %v1873_v2 = vmul.f32 %v1857_v19, %v3924_v36  ;;  %v2986_v21 = vpop.eup %2985  ;;  %v1708_v59 = vor.u32 1.1754944e-38, %v1707_v6  ;;  %v1970_v42 = vmul.f32 %v1954_v26, %v3893_v20  ;;  %v1342_v19 = vpop.f32.mrf.mxu2 }
 0x215   : > { %2127 = vst [vmem:[%s3380_s9 + $0x30] sm:$0xff] %v2111_v32  ;;  %v1457_v16 = vadd.f32 %v1436_v9, %v1080_v22  ;;  %v1704_v15 = vsel %vm1703_vm14, %v2982_v29, %v1700_v8  ;;  %v1712_v4 = vmul.f32 %v2986_v21, %v3930_v18  ;;  %v1720_v28 = vand.u32 2147483647, %v3930_v18 }
 0x216   : > { %v2080_v24 = vsel %vm2048_vm11, %v2064_v62, %v2032_v58  ;;  %v2706_v46 = vadd.f32 -0.28449672, %v1873_v2  ;;  %v3954_v17 = vsel %vm1706_vm15, %v1708_v59, %v1704_v15  ;;  %v1722_v61 = vand.u32 2147483648, %v3930_v18 }
 0x217   : > { %v2096_v60 = vadd.f32 1.0, %v2080_v24  ;;  %v1810_v20 = vmul.f32 1.0614054, %v3954_v17  ;;  %v1713_v54 = vsub.f32 1.0, %v1712_v4  ;;  %v3961_v39 = vmul.f32 0.70710677, %v3946_v5 }
 0x218   : > { %v1905_v14 = vmul.f32 %v2706_v46, %v3924_v36  ;;  %vm1717_vm0 = vweird.f32 %v2986_v21  ;;  %v3969_v38 = vadd.f32 %v3966_v37, %v1457_v16  ;;  %v1389_v29 = vadd.f32 %v1388_v53, %v1339_v12 }
 0x219   : > { %v2112_v23 = vmul.f32 %v2096_v60, %v1488_v49  ;;  %v2691_v3 = vadd.f32 -1.4531521, %v1810_v20  ;;  %v1714_v1 = vmul.f32 %v2986_v21, %v1713_v54  ;;  %v3972_v55 = vand.u32 2147483647, %v3961_v39  ;;  %v1084_v46 = vpop.f32.mrf.mxu1 }
 0x21a   : > { %v1921_v48 = vadd.f32 0.2548296, %v1905_v14  ;;  %v1995_v26 = vmul.f32 1.442695, %v1970_v42  ;;  %vm1716_vm1 = vweird.f32 %v3930_v18  ;;  %v1955_v49 = vsub.f32 0.0, %v3918_v31 }
 0x21b   : > { %2128 = vst [vmem:[%s3380_s9 + $0x38] sm:$0xff] %v2112_v23  ;;  %v3978_v44 = vmul.f32 0.70710677, %v3969_v38  ;;  %v1842_v52 = vmul.f32 %v2691_v3, %v3954_v17  ;;  %v1715_v41 = vadd.f32 %v2986_v21, %v1714_v1  ;;  %v1540_v0 = vmul.f32 0.3275911, %v3972_v55  ;;  %vm1718_vm2 = vmor %vm1716_vm1, %vm1717_vm0 }
 0x21c   : > { %v1937_v25 = vmul.f32 %v1921_v48, %v3924_v36  ;;  %vm1721_vm3 = vcmp.eq.f32.partialorder %v1720_v28, 8.507059e+37  ;;  %v1723_v35 = vor.u32 1.1754944e-38, %v1722_v61  ;;  %v1438_v18 = vadd.f32 %v1437_v50, %v1389_v29  ;;  %v1391_v36 = vpop.f32.mrf.mxu3 }
 0x21d   : > { %v3985_v27 = vand.u32 2147483647, %v3978_v44  ;;  %v1858_v6 = vadd.f32 1.4214138, %v1842_v52  ;;  %v1719_v63 = vsel %vm1718_vm2, %v2986_v21, %v1715_v41  ;;  %v3987_v58 = vadd.f32 1.0, %v1540_v0 }
 0x21e   : > { %v2017_v13 = vmul.f32 %v2984_v56, %v1937_v25  ;;  %v3989_v51 = vsel %vm1721_vm3, %v1723_v35, %v1719_v63  ;;  %v1971_v10 = vmul.f32 %v1955_v49, %v3918_v31  ;;  %v1082_v22 = vadd.f32 %v1081_v33, %v3617_v57 }
 0x21f   : > { %v1541_v32 = vmul.f32 0.3275911, %v3985_v27  ;;  %v1874_v62 = vmul.f32 %v1858_v6, %v3954_v17  ;;  %v1811_v2 = vmul.f32 1.0614054, %v3989_v51  ;;  %2987 = vrcp.f32 %v3987_v58 }
 0x220   : > { %v2033_v9 = vsub.f32 1.0, %v2017_v13  ;;  %v1458_v56 = vadd.f32 %v1438_v18, %v1082_v22  ;;  %v1392_v8 = vadd.f32 %v1391_v36, %v1342_v19  ;;  %v1489_v31 = vmul.f32 0.5, %v3839_v47 }
 0x221   : > { %v2707_v53 = vadd.f32 -0.28449672, %v1874_v62  ;;  %v2692_v21 = vadd.f32 -1.4531521, %v1811_v2  ;;  %v3997_v59 = vadd.f32 1.0, %v1541_v32  ;;  %vm2049_vm4 = vcmp.lt.f32.partialorder %v3853_v45, 0.0  ;;  %v1440_v45 = vpop.f32.mrf.mxu0 }
 0x222   : > { %v2065_v12 = vsub.f32 0.0, %v2033_v9  ;;  %2989 = vpow2.f32 %v1995_v26  ;;  %v1997_v57 = vmul.f32 1.442695, %v1971_v10  ;;  %v4005_v4 = vmul.f32 0.5, %v3877_v43 }
 0x223   : > { %v1906_v16 = vmul.f32 %v2707_v53, %v3954_v17  ;;  %v1843_v24 = vmul.f32 %v2692_v21, %v3989_v51  ;;  %2991 = vrcp.f32 %v3997_v59  ;;  %v1735_v60 = vand.u32 2147483647, %v3987_v58 }
 0x224   : > { %v2081_v42 = vsel %vm2049_vm4, %v2065_v12, %v2033_v9  ;;  %v4009_v47 = vadd.f32 %v3966_v37, %v1458_v56  ;;  %v1737_v20 = vand.u32 2147483648, %v3987_v58  ;;  %v1441_v54 = vadd.f32 %v1440_v45, %v1392_v8 }
 0x225   : > { %v2097_v15 = vadd.f32 1.0, %v2081_v42  ;;  %v2988_v28 = vpop.eup %2987  ;;  %v1922_v61 = vadd.f32 0.2548296, %v1906_v16  ;;  %v1859_v14 = vadd.f32 1.4214138, %v1843_v24  ;;  %vm2050_vm5 = vcmp.lt.f32.partialorder %v3886_v34, 0.0 }
 0x226   : > { %v1727_v29 = vmul.f32 %v2988_v28, %v3987_v58  ;;  %v1085_v43 = vadd.f32 %v1084_v46, %v3621_v11  ;;  %2993 = vpow2.f32 %v1997_v57  ;;  %v1956_v1 = vsub.f32 0.0, %v3972_v55  ;;  %v1344_v46 = vpop.f32.mrf.mxu2 }
 0x227   : > { %v2113_v23 = vmul.f32 %v2097_v15, %v1489_v31  ;;  %v1938_v48 = vmul.f32 %v1922_v61, %v3954_v17  ;;  %v1875_v3 = vmul.f32 %v1859_v14, %v3989_v51  ;;  %vm1731_vm6 = vweird.f32 %v3987_v58  ;;  %v1393_v15 = vpop.f32.mrf.mxu3 }
 0x228   : > { %v2990_v33 = vpop.eup %2989  ;;  %v1728_v26 = vsub.f32 1.0, %v1727_v29  ;;  %v4021_v49 = vmul.f32 0.70710677, %v4009_v47  ;;  %v1459_v50 = vadd.f32 %v1441_v54, %v1085_v43  ;;  %vm4023_vm7 = vcmp.eq.f32.partialorder %v1735_v60, 8.507059e+37 }
 0x229   : > { %2129 = vst [vmem:[%s3380_s9 + $0x40] sm:$0xff] %v2113_v23  ;;  %v2992_v25 = vpop.eup %2991  ;;  %v2018_v52 = vmul.f32 %v2990_v33, %v1938_v48  ;;  %v2708_v41 = vadd.f32 -0.28449672, %v1875_v3  ;;  %v1738_v17 = vor.u32 1.1754944e-38, %v1737_v20  ;;  %vm1732_vm8 = vweird.f32 %v2988_v28 }
 0x22a   : > { %v1729_v0 = vmul.f32 %v2988_v28, %v1728_v26  ;;  %v1742_v35 = vmul.f32 %v2992_v25, %v3997_v59  ;;  %v4029_v18 = vand.u32 2147483647, %v4021_v49  ;;  %vm1746_vm9 = vweird.f32 %v3997_v59  ;;  %vm1733_vm10 = vmor %vm1731_vm6, %vm1732_vm8 }
 0x22b   : > { %v2034_v13 = vsub.f32 1.0, %v2018_v52  ;;  %v1907_v6 = vmul.f32 %v2708_v41, %v3989_v51  ;;  %v4034_v63 = vadd.f32 %v3966_v37, %v1459_v50  ;;  %v1750_v10 = vand.u32 2147483647, %v3997_v59  ;;  %v1086_v50 = vpop.f32.mrf.mxu1 }
 0x22c   : > { %v1730_v19 = vadd.f32 %v2988_v28, %v1729_v0  ;;  %v1743_v36 = vsub.f32 1.0, %v1742_v35  ;;  %v1542_v32 = vmul.f32 0.3275911, %v4029_v18  ;;  %v2994_v22 = vpop.eup %2993  ;;  %v1752_v2 = vand.u32 2147483648, %v3997_v59 }
 0x22d   : > { %v2066_v9 = vsub.f32 0.0, %v2034_v13  ;;  %v1923_v62 = vadd.f32 0.2548296, %v1907_v6  ;;  %v4042_v56 = vmul.f32 0.70710677, %v4034_v63  ;;  %vm1747_vm11 = vweird.f32 %v2992_v25 }
 0x22e   : > { %v1734_v8 = vsel %vm1733_vm10, %v2988_v28, %v1730_v19  ;;  %v1744_v12 = vmul.f32 %v2992_v25, %v1743_v36  ;;  %v4044_v53 = vadd.f32 1.0, %v1542_v32  ;;  %v1972_v60 = vmul.f32 %v1956_v1, %v3972_v55  ;;  %vm1748_vm12 = vmor %vm1746_vm9, %vm1747_vm11 }
 0x22f   : > { %v2082_v21 = vsel %vm2050_vm5, %v2066_v9, %v2034_v13  ;;  %v1939_v31 = vmul.f32 %v1923_v62, %v3989_v51  ;;  %v4051_v57 = vsel %vm4023_vm7, %v1738_v17, %v1734_v8  ;;  %v4054_v58 = vand.u32 2147483647, %v4042_v56 }
 0x230   : > { %v2098_v42 = vadd.f32 1.0, %v2082_v21  ;;  %v1812_v16 = vmul.f32 1.0614054, %v4051_v57  ;;  %v1745_v24 = vadd.f32 %v2992_v25, %v1744_v12  ;;  %2995 = vrcp.f32 %v4044_v53 }
 0x231   : > { %v2019_v34 = vmul.f32 %v2994_v22, %v1939_v31  ;;  %v1753_v51 = vor.u32 1.1754944e-38, %v1752_v2  ;;  %v1957_v45 = vsub.f32 0.0, %v3985_v27  ;;  %vm1751_vm13 = vcmp.eq.f32.partialorder %v1750_v10, 8.507059e+37 }
 0x232   : > { %v2114_v28 = vmul.f32 %v2098_v42, %v4005_v4  ;;  %v2693_v61 = vadd.f32 -1.4531521, %v1812_v16  ;;  %v1749_v14 = vsel %vm1748_vm12, %v2992_v25, %v1745_v24  ;;  %v1394_v23 = vadd.f32 %v1393_v15, %v1344_v46  ;;  %v1442_v25 = vpop.f32.mrf.mxu0 }
 0x233   : > { %v2035_v20 = vsub.f32 1.0, %v2019_v34  ;;  %v4063_v54 = vsel %vm1751_vm13, %v1753_v51, %v1749_v14  ;;  %v1543_v59 = vmul.f32 0.3275911, %v4054_v58  ;;  %v1999_v48 = vmul.f32 1.442695, %v1972_v60 }
 0x234   : > { %2130 = vst [vmem:[%s3380_s9 + $0x48] sm:$0xff] %v2114_v28  ;;  %v1844_v29 = vmul.f32 %v2693_v61, %v4051_v57  ;;  %v1813_v55 = vmul.f32 1.0614054, %v4063_v54  ;;  %v1973_v3 = vmul.f32 %v1957_v45, %v3985_v27  ;;  %vm2051_vm14 = vcmp.lt.f32.partialorder %v3907_v30, 0.0 }
 0x235   : > { %v2067_v43 = vsub.f32 0.0, %v2035_v20  ;;  %v4071_v26 = vadd.f32 1.0, %v1543_v59  ;;  %v1491_v52 = vmul.f32 0.5, %v3900_v40  ;;  %v1443_v17 = vadd.f32 %v1442_v25, %v1394_v23 }
 0x236   : > { %v2996_v1 = vpop.eup %2995  ;;  %v1860_v4 = vadd.f32 1.4214138, %v1844_v29  ;;  %v2694_v33 = vadd.f32 -1.4531521, %v1813_v55  ;;  %v2001_v30 = vmul.f32 1.442695, %v1973_v3  ;;  %v1087_v6 = vadd.f32 %v1086_v50, %v3623_v7 }
 0x237   : > { %v2083_v41 = vsel %vm2051_vm14, %v2067_v43, %v2035_v20  ;;  %v1757_v11 = vmul.f32 %v2996_v1, %v4044_v53  ;;  %2997 = vrcp.f32 %v4071_v26  ;;  %v1767_v10 = vand.u32 2147483648, %v4044_v53 }
 0x238   : > { %v2099_v0 = vadd.f32 1.0, %v2083_v41  ;;  %v1876_v35 = vmul.f32 %v1860_v4, %v4051_v57  ;;  %v1845_v27 = vmul.f32 %v2694_v33, %v4063_v54  ;;  %2999 = vpow2.f32 %v1999_v48 }
 0x239   : > { %v1758_v13 = vsub.f32 1.0, %v1757_v11  ;;  %vm1762_vm15 = vweird.f32 %v2996_v1  ;;  %v1765_v22 = vand.u32 2147483647, %v4044_v53  ;;  %v1460_v9 = vadd.f32 %v1443_v17, %v1087_v6 }
 0x23a   : > { %v2115_v19 = vmul.f32 %v2099_v0, %v1491_v52  ;;  %v2709_v36 = vadd.f32 -0.28449672, %v1876_v35  ;;  %v1861_v40 = vadd.f32 1.4214138, %v1845_v27  ;;  %vm1761_vm0 = vweird.f32 %v4044_v53 }
 0x23b   : > { %v1759_v32 = vmul.f32 %v2996_v1, %v1758_v13  ;;  %v1958_v7 = vsub.f32 0.0, %v4029_v18  ;;  %v4087_v12 = vadd.f32 %v3966_v37, %v1460_v9  ;;  %vm1763_vm1 = vmor %vm1761_vm0, %vm1762_vm15  ;;  %v1768_v16 = vor.u32 1.1754944e-38, %v1767_v10 }
 0x23c   : > { %2131 = vst [vmem:[%s3380_s9 + $0x50] sm:$0xff] %v2115_v19  ;;  %v1908_v62 = vmul.f32 %v2709_v36, %v4051_v57  ;;  %v1877_v2 = vmul.f32 %v1861_v40, %v4063_v54  ;;  %3001 = vpow2.f32 %v2001_v30  ;;  %vm1766_vm2 = vcmp.eq.f32.partialorder %v1765_v22, 8.507059e+37 }
 0x23d   : > { %v1760_v8 = vadd.f32 %v2996_v1, %v1759_v32  ;;  %v2998_v21 = vpop.eup %2997  ;;  %v4093_v51 = vmul.f32 0.70710677, %v4087_v12  ;;  %v1974_v45 = vmul.f32 %v1958_v7, %v4029_v18  ;;  %v1782_v20 = vand.u32 2147483648, %v4071_v26 }
 0x23e   : > { %v1924_v31 = vadd.f32 0.2548296, %v1908_v62  ;;  %v2710_v42 = vadd.f32 -0.28449672, %v1877_v2  ;;  %v3000_v24 = vpop.eup %2999  ;;  %v1772_v15 = vmul.f32 %v2998_v21, %v4071_v26  ;;  %vm1777_vm3 = vweird.f32 %v2998_v21 }
 0x23f   : > { %v1764_v46 = vsel %vm1763_vm1, %v2996_v1, %v1760_v8  ;;  %v4098_v23 = vand.u32 2147483647, %v4093_v51  ;;  %vm2052_vm4 = vcmp.lt.f32.partialorder %v3961_v39, 0.0  ;;  %v2003_v1 = vmul.f32 1.442695, %v1974_v45 }
 0x240   : > { %v1940_v34 = vmul.f32 %v1924_v31, %v4051_v57  ;;  %v1909_v53 = vmul.f32 %v2710_v42, %v4063_v54  ;;  %v1769_v60 = vsel %vm1766_vm2, %v1768_v16, %v1764_v46  ;;  %v1773_v28 = vsub.f32 1.0, %v1772_v15 }
 0x241   : > { %v1814_v37 = vmul.f32 1.0614054, %v1769_v60  ;;  %v1780_v57 = vand.u32 2147483647, %v4071_v26  ;;  %v1544_v18 = vmul.f32 0.3275911, %v4098_v23  ;;  %vm1776_vm5 = vweird.f32 %v4071_v26 }
 0x242   : > { %v2020_v61 = vmul.f32 %v3000_v24, %v1940_v34  ;;  %v1925_v14 = vadd.f32 0.2548296, %v1909_v53  ;;  %v1774_v55 = vmul.f32 %v2998_v21, %v1773_v28  ;;  %v3002_v48 = vpop.eup %3001  ;;  %vm1778_vm6 = vmor %vm1776_vm5, %vm1777_vm3  ;;  %v1783_v25 = vor.u32 1.1754944e-38, %v1782_v20 }
 0x243   : > { %v2695_v29 = vadd.f32 -1.4531521, %v1814_v37  ;;  %v1560_v52 = vadd.f32 1.0, %v1544_v18  ;;  %vm1781_vm7 = vcmp.eq.f32.partialorder %v1780_v57, 8.507059e+37  ;;  %v1959_v17 = vsub.f32 0.0, %v4054_v58 }
 0x244   : > { %v2036_v59 = vsub.f32 1.0, %v2020_v61  ;;  %v1941_v43 = vmul.f32 %v1925_v14, %v4063_v54  ;;  %v1775_v4 = vadd.f32 %v2998_v21, %v1774_v55  ;;  %v1492_v27 = vmul.f32 0.5, %v3946_v5 }
 0x245   : > { %v1846_v3 = vmul.f32 %v2695_v29, %v1769_v60  ;;  %3003 = vrcp.f32 %v1560_v52  ;;  %vm2053_vm8 = vcmp.lt.f32.partialorder %v3978_v44, 0.0  ;;  %v1975_v39 = vmul.f32 %v1959_v17, %v4054_v58 }
 0x246   : > { %v2068_v33 = vsub.f32 0.0, %v2036_v59  ;;  %v2021_v50 = vmul.f32 %v3002_v48, %v1941_v43  ;;  %v1779_v11 = vsel %vm1778_vm6, %v2998_v21, %v1775_v4  ;;  %3005 = vpow2.f32 %v2003_v1 }
 0x247   : > { %v1862_v41 = vadd.f32 1.4214138, %v1846_v3  ;;  %v1784_v35 = vsel %vm1781_vm7, %v1783_v25, %v1779_v11  ;;  %v1493_v32 = vmul.f32 0.5, %v3969_v38  ;;  %v2005_v31 = vmul.f32 1.442695, %v1975_v39 }
 0x248   : > { %v2084_v54 = vsel %vm2052_vm4, %v2068_v33, %v2036_v59  ;;  %v2037_v0 = vsub.f32 1.0, %v2021_v50  ;;  %v1815_v13 = vmul.f32 1.0614054, %v1784_v35  ;;  %v1795_v46 = vand.u32 2147483647, %v1560_v52 }
 0x249   : > { %v2100_v26 = vadd.f32 1.0, %v2084_v54  ;;  %v1878_v30 = vmul.f32 %v1862_v41, %v1769_v60  ;;  %v1797_v15 = vand.u32 2147483648, %v1560_v52  ;;  %3007 = vpow2.f32 %v2005_v31 }
 0x24a   : > { %v2069_v6 = vsub.f32 0.0, %v2037_v0  ;;  %v2696_v40 = vadd.f32 -1.4531521, %v1815_v13  ;;  %vm1791_vm10 = vweird.f32 %v1560_v52  ;;  %vm1796_vm12 = vcmp.eq.f32.partialorder %v1795_v46, 8.507059e+37 }
 0x24b   : > { %v2116_v19 = vmul.f32 %v2100_v26, %v1492_v27  ;;  %v2711_v36 = vadd.f32 -0.28449672, %v1878_v30  ;;  %v3004_v62 = vpop.eup %3003  ;;  %v1798_v28 = vor.u32 1.1754944e-38, %v1797_v15  ;;  %vm2054_vm13 = vcmp.lt.f32.partialorder %v4021_v49, 0.0 }
 0x24c   : > { %v2085_v10 = vsel %vm2053_vm8, %v2069_v6, %v2037_v0  ;;  %v1847_v5 = vmul.f32 %v2696_v40, %v1784_v35  ;;  %v1787_v21 = vmul.f32 %v3004_v62, %v1560_v52  ;;  %v3006_v24 = vpop.eup %3005  ;;  %vm1792_vm9 = vweird.f32 %v3004_v62 }
 0x24d   : > { %2132 = vst [vmem:[%s3380_s9 + $0x58] sm:$0xff] %v2116_v19  ;;  %v2101_v22 = vadd.f32 1.0, %v2085_v10  ;;  %v1910_v9 = vmul.f32 %v2711_v36, %v1769_v60  ;;  %vm1793_vm11 = vmor %vm1791_vm10, %vm1792_vm9  ;;  %v1960_v29 = vsub.f32 0.0, %v4098_v23  ;;  %v1494_v18 = vmul.f32 0.5, %v4009_v47 }
 0x24e   : > { %v1863_v7 = vadd.f32 1.4214138, %v1847_v5  ;;  %v1788_v16 = vsub.f32 1.0, %v1787_v21  ;;  %vm2055_vm14 = vcmp.lt.f32.partialorder %v4042_v56, 0.0  ;;  %v1495_v47 = vmul.f32 0.5, %v4034_v63 }
 0x24f   : > { %v2117_v2 = vmul.f32 %v2101_v22, %v1493_v32  ;;  %v1926_v8 = vadd.f32 0.2548296, %v1910_v9  ;;  %v3008_v43 = vpop.eup %3007  ;;  %v1976_v33 = vmul.f32 %v1960_v29, %v4098_v23  ;;  %vm2056_vm15 = vcmp.lt.f32.partialorder %v4093_v51, 0.0 }
 0x250   : > { %v1879_v42 = vmul.f32 %v1863_v7, %v1784_v35  ;;  %v1789_v53 = vmul.f32 %v3004_v62, %v1788_v16  ;;  %v1496_v19 = vmul.f32 0.5, %v4087_v12 }
 0x251   : > { %2133 = vst [vmem:[%s3380_s9 + $0x60] sm:$0xff] %v2117_v2  ;;  %v1942_v44 = vmul.f32 %v1926_v8, %v1769_v60  ;;  %v2007_v41 = vmul.f32 1.442695, %v1976_v33 }
 0x252   : > { %v2712_v34 = vadd.f32 -0.28449672, %v1879_v42  ;;  %v1790_v45 = vadd.f32 %v3004_v62, %v1789_v53 }
 0x253   : > { %v2022_v58 = vmul.f32 %v3006_v24, %v1942_v44  ;;  %3009 = vpow2.f32 %v2007_v41 }
 0x254   : > { %v1911_v37 = vmul.f32 %v2712_v34, %v1784_v35  ;;  %v1794_v20 = vsel %vm1793_vm11, %v3004_v62, %v1790_v45 }
 0x255   : > { %v2038_v38 = vsub.f32 1.0, %v2022_v58  ;;  %v1799_v60 = vsel %vm1796_vm12, %v1798_v28, %v1794_v20 }
 0x256   : > { %v1927_v14 = vadd.f32 0.2548296, %v1911_v37  ;;  %v1816_v59 = vmul.f32 1.0614054, %v1799_v60 }
 0x257   : > { %v2070_v61 = vsub.f32 0.0, %v2038_v38 }
 0x258   : > { %v1943_v57 = vmul.f32 %v1927_v14, %v1784_v35  ;;  %v2697_v1 = vadd.f32 -1.4531521, %v1816_v59 }
 0x259   : > { %v2086_v55 = vsel %vm2054_vm13, %v2070_v61, %v2038_v38  ;;  %v3010_v30 = vpop.eup %3009 }
 0x25a   : > { %v2102_v48 = vadd.f32 1.0, %v2086_v55  ;;  %v2023_v3 = vmul.f32 %v3008_v43, %v1943_v57  ;;  %v1848_v25 = vmul.f32 %v2697_v1, %v1799_v60 }
 0x25c   : > { %v2118_v4 = vmul.f32 %v2102_v48, %v1494_v18  ;;  %v2039_v50 = vsub.f32 1.0, %v2023_v3  ;;  %v1864_v52 = vadd.f32 1.4214138, %v1848_v25 }
 0x25e   : > { %2134 = vst [vmem:[%s3380_s9 + $0x68] sm:$0xff] %v2118_v4  ;;  %v2071_v49 = vsub.f32 0.0, %v2039_v50  ;;  %v1880_v17 = vmul.f32 %v1864_v52, %v1799_v60 }
 0x260   : > { %v2087_v11 = vsel %vm2055_vm14, %v2071_v49, %v2039_v50  ;;  %v2713_v0 = vadd.f32 -0.28449672, %v1880_v17 }
 0x261   : > { %v2103_v54 = vadd.f32 1.0, %v2087_v11 }
 0x262   : > { %v1912_v23 = vmul.f32 %v2713_v0, %v1799_v60 }
 0x263   : > { %v2119_v35 = vmul.f32 %v2103_v54, %v1495_v47 }
 0x264   : > { %v1928_v27 = vadd.f32 0.2548296, %v1912_v23 }
 0x265   : > { %2135 = vst [vmem:[%s3380_s9 + $0x70] sm:$0xff] %v2119_v35 }
 0x266   : > { %v1944_v26 = vmul.f32 %v1928_v27, %v1799_v60 }
 0x268   : > { %v2024_v56 = vmul.f32 %v3010_v30, %v1944_v26 }
 0x26a   : > { %v2040_v13 = vsub.f32 1.0, %v2024_v56 }
 0x26c   : > { %v2072_v63 = vsub.f32 0.0, %v2040_v13 }
 0x26e   : > { %v2088_v6 = vsel %vm2056_vm15, %v2072_v63, %v2040_v13 }
 0x26f   : > { %v2104_v36 = vadd.f32 1.0, %v2088_v6 }
 0x271   : > { %v2120_v40 = vmul.f32 %v2104_v36, %v1496_v19 }
 0x273   : > { %2136 = vst [vmem:[%s3380_s9 + $0x78] sm:$0xff] %v2120_v40 }
 0x274   : > { %3125 = shalt.err (!%p3122_p7)
}
 0x275   : > { %s3204_s9 = smov 128   ;;  %s3205_s24 = smov 8  }
 0x276   : > { %2861 = dma.vmem_to_hbm [thread:$0]  (%p3278_p3), %s2153_s15, 2048, %s2155_s16, %s2138_s6, %s3204_s9, %s3204_s9, %s3205_s24  }
 0x277 PF: > { %p2875_p9 = scmp.ge.s32.totalorder %s3198_s19, 2  ;;  %s2169_s4 = sand.u32 1, %s3170_s12  }
 0x278   : > { %p4208_p10 = scmp.ne.s32.totalorder %s4188_s27, 0  ;;  %s2170_s10 = scalar_lea.sflag [#allocation6], %s2169_s4 }
 0x27a   : > { %p2868_p11 = pnand %p2875_p9, %p4208_p10 }
 0x27c   : > { %p2869_p12 = pneg %p2868_p11 }
 0x27e   : > { %3165 = dma.done.wait (%p2869_p12), %s2170_s10, 2048  }
 0x27f   : > { %3167 = vsyncadd (%p2869_p12), %s2170_s10, 4294965248  ;;  %s17_s19 = sadd.s32 1, %s3198_s19   ;;  %s4209_s15 = sld [smem:[#allocation17_spill]] }
 0x280   : > { %p14_p0 = scmp.ge.s32.totalorder %s17_s19, 6   ;;  %s4210_s16 = sld [smem:[#allocation18_spill]] }
 0x281   : > { %s4211_s17 = sld [smem:[#allocation19_spill]]  ;;  %s4213_s12 = smov %s3174_s13 }
 0x282   : > { %s4212_s18 = sld [smem:[#allocation20_spill]]  ;;  %s4214_s13 = smov %s3178_s14 }
 0x283   : > { %s4215_s14 = smov %s3308_s8  ;;  %16 = sbr.rel (!%p14_p0) target bundleno = 8 (0x8), region = 90 }
 0x288   :  { %2176 = vsyncpa [#allocation5], 1 }
 0x289   :  { %2178 = vsyncpa [#allocation5 + $0x1], 1 }
 0x28a   :  { %2179 = vsyncpa [#allocation6], 1 }
 0x28b   :  { %2181 = vsyncpa [#allocation6 + $0x1], 1 }
 0x28c   :  { %2182 = vsyncmov [#allocation3] }
 0x28f   :  { %s2183_s26 = vpop.sfrf %2182 }
 0x290   :  { %p2720_p3 = scmp.ne.s32.totalorder %s2183_s26, 0 }
 0x292   :  { %2187 = shalt.err (%p2720_p3)  }
 0x293   :  { %2189 = vsyncmov [#allocation3 + $0x1] }
 0x296   :  { %s2190_s27 = vpop.sfrf %2189 }
 0x297   :  { %p2721_p1 = scmp.ne.s32.totalorder %s2190_s27, 0 }
 0x299   :  { %2194 = shalt.err (%p2721_p1)  }

</bundles_post_ra>
